<compile_context>
chip_gen: v7x
topology: tpu7x:2x2x1
jax: 0.10.0
libtpu: 0.0.40
codegen_flags: <defaults>
</compile_context>

<pallas_src>
import functools

import jax
import jax.numpy as jnp
from jax.experimental import pallas as pl
from jax.experimental.pallas import tpu as pltpu


def _distnet_kernel(x_ref, p_ref, out_ref, dist_sc, *, H, L, phi1_dtype):
    B, N, D = x_ref.shape
    R = B * N                                    # rows indexed by (batch, point i)
    x = x_ref[...].astype(jnp.float32)           # (B, N, D)

    # ---- unpack the packed parameter buffer (one DMA, static slices) -------
    w2 = p_ref[0:H, 0:H]                         # (H, H) phi2 weight
    wr = p_ref[H:2 * H, 0:L]                     # (H, L) rho weight
    w1 = p_ref[2 * H + 0:2 * H + 1, 0:H]         # (1, H) phi1 weight (1 -> H)
    b1 = p_ref[2 * H + 1:2 * H + 2, 0:H]         # (1, H) phi1 bias
    b2 = p_ref[2 * H + 2:2 * H + 3, 0:H]         # (1, H) phi2 bias
    br = p_ref[2 * H + 3:2 * H + 4, 0:L]         # (1, L) rho bias

    # ---- torch.cdist(x, x), p=2: exact pairwise differences on the VPU -----
    # No x @ x.T gram: avoids an XLU transpose, a K=D(=3) MXU pass that is
    # >97% padding, and the ||a||^2+||b||^2-2<a,b> cancellation (this also
    # matches torch.cdist, which uses direct differences at these sizes).
    # B and D are tiny compile-time constants, so these loops fully unroll.
    for b in range(B):
        xb = x[b]                                              # (N, D)
        d2 = jnp.zeros((N, N), jnp.float32)
        for k in range(D):
            ck = xb[:, k:k + 1]                                # (N, 1)
            dk = ck - ck.T                                     # (N, N)
            d2 = d2 + dk * dk
        # Store with a trailing unit lane so the flattened (B*N*N, 1) view
        # below is a pure leading-dim merge (no lane-dim reshape needed).
        dist_sc[b * N:(b + 1) * N, :, :] = jnp.sqrt(d2)[:, :, None]

    dist_col = dist_sc[...].reshape(R * N, 1)                  # rows = (b, i, j)

    # ---- MatrixDeepSets (doub=True) -----------------------------------------
    # phi1: per-entry 1 -> H affine + ReLU as one 2-D (rows, H) slab over the
    # whole batch (no (N, N, H)-style 3-D broadcast).  The rank-1 product stays
    # on the VPU: with K=1 the MXU would be ~99% padding.
    cdt = phi1_dtype                  # bf16 on v6e/v7x (bf16 VPU), f32 on v5e-
    h1 = jnp.maximum(
        dist_col.astype(cdt) * w1.astype(cdt) + b1.astype(cdt), 0.0)  # (B*N*N, H)

    # inner-set (j) sum pooling, accumulated in f32.
    # TODO(synk): if num_points is ever scaled up, tile this j-reduction with a
    # VMEM accumulator instead of materializing (B*N*N, H) (size the tile
    # against 64 MiB VMEM on v7x / 128 MiB on v5e-v6e).
    s1 = jnp.sum(h1.astype(jnp.float32).reshape(R, N, H), axis=1)     # (B*N, H)

    # phi2: H -> H affine + ReLU, a single MXU matmul for the whole batch.
    h2 = jnp.maximum(
        jnp.dot(s1, w2, preferred_element_type=jnp.float32) + b2, 0.0)  # (B*N, H)

    # outer-set (i) sum pooling per batch element.
    s2 = jnp.sum(h2.reshape(B, N, H), axis=1)                           # (B, H)

    # rho: H -> num_labels; one store of the full (B, L) output block.
    out = jnp.dot(s2, wr, preferred_element_type=jnp.float32) + br      # (B, L)
    out_ref[...] = out.astype(out_ref.dtype)


def _pack_params(w1, b1, w2, b2, wr, br):
    """Pack all head parameters into one lane-dense (rows, >=128) f32 buffer."""
    H = w2.shape[0]
    L = wr.shape[1]
    rows = pl.cdiv(2 * H + 4, 8) * 8
    cols = pl.cdiv(max(H, L), 128) * 128
    p = jnp.zeros((rows, cols), jnp.float32)
    p = p.at[0:H, 0:H].set(w2.astype(jnp.float32))
    p = p.at[H:2 * H, 0:L].set(wr.astype(jnp.float32))
    p = p.at[2 * H + 0, 0:H].set(w1.reshape(-1).astype(jnp.float32))
    p = p.at[2 * H + 1, 0:H].set(b1.reshape(-1).astype(jnp.float32))
    p = p.at[2 * H + 2, 0:H].set(b2.reshape(-1).astype(jnp.float32))
    p = p.at[2 * H + 3, 0:L].set(br.reshape(-1).astype(jnp.float32))
    return p


@functools.partial(jax.jit, static_argnames=("phi1_dtype",))
def distnet_forward(x, w1, b1, w2, b2, wr, br, *, phi1_dtype=jnp.float32):
    B, N, D = x.shape
    H = w2.shape[0]
    L = wr.shape[1]
    params = _pack_params(w1, b1, w2, b2, wr, br)
    PR, PC = params.shape

    kernel = functools.partial(_distnet_kernel, H=H, L=L, phi1_dtype=phi1_dtype)
    return pl.pallas_call(
        kernel,
        out_shape=jax.ShapeDtypeStruct((B, L), jnp.float32),
        # Whole problem in one grid step: the batch is fused so there is a
        # single prologue, one x DMA, one parameter DMA and one output store.
        grid=(1,),
        in_specs=[
            pl.BlockSpec((B, N, D), lambda i: (0, 0, 0)),   # x, full block
            pl.BlockSpec((PR, PC), lambda i: (0, 0)),       # packed parameters
        ],
        out_specs=pl.BlockSpec((B, L), lambda i: (0, 0)),   # full (B, L) block
        scratch_shapes=[pltpu.VMEM((B * N, N, 1), jnp.float32)],  # pairwise dists
        compiler_params=pltpu.CompilerParams(
            dimension_semantics=("arbitrary",),
        ),
    )(x, params)


def _phi1_compute_dtype():
    """bf16 for the phi1 elementwise stage only where the VPU has a bf16 path."""
    try:
        kind = jax.devices()[0].device_kind.lower()
    except Exception:
        return jnp.float32
    if any(tag in kind for tag in ("v6", "v7", "7x")):
        return jnp.bfloat16       # v6e / v7x: bf16 VPU, 2x packing per vreg
    return jnp.float32            # v5e and older: no bf16 VPU, casts only add work


def _reference(x, w1, b1, w2, b2, wr, br):
    """Pure-JAX reference of the same (assumed) forward pass."""
    diff = x[:, :, None, :] - x[:, None, :, :]
    dist = jnp.sqrt(jnp.sum(diff * diff, axis=-1))                 # (B, N, N)
    h1 = jax.nn.relu(dist[..., None] * w1[0] + b1[0])              # (B, N, N, H)
    s1 = jnp.sum(h1, axis=2)                                       # (B, N, H)
    h2 = jax.nn.relu(jnp.matmul(s1, w2) + b2[0])                   # (B, N, H)
    s2 = jnp.sum(h2, axis=1)                                       # (B, H)
    return jnp.matmul(s2, wr) + br                                 # (B, L)


if __name__ == "__main__":
    # Shapes consistent with the module: input_dim D = 3 (point coordinates),
    # num_points N = 16, hidden H = 32, num_labels L = 4, batch B = 2.
    B, N, D, H, L = 2, 16, 3, 32, 4

    key = jax.random.PRNGKey(0)
    kx, k1, k2, k3, k4, k5, k6 = jax.random.split(key, 7)

    x = jax.random.normal(kx, (B, N, D), dtype=jnp.float32)
    # Deterministic synthetic parameters for the (assumed) MatrixDeepSets head.
    w1 = jax.random.normal(k1, (1, H), dtype=jnp.float32) * 0.1   # phi1: 1 -> H
    b1 = jax.random.normal(k2, (1, H), dtype=jnp.float32) * 0.01
    w2 = jax.random.normal(k3, (H, H), dtype=jnp.float32) * 0.1   # phi2: H -> H
    b2 = jax.random.normal(k4, (1, H), dtype=jnp.float32) * 0.01
    wr = jax.random.normal(k5, (H, L), dtype=jnp.float32) * 0.1   # rho:  H -> L
    br = jax.random.normal(k6, (1, L), dtype=jnp.float32) * 0.01

    phi1_dt = _phi1_compute_dtype()
    out = distnet_forward(x, w1, b1, w2, b2, wr, br, phi1_dtype=phi1_dt)
    jax.block_until_ready(out)
    assert out.shape == (B, L), out.shape

    # Tolerance-checked against a pure-JAX reference (loose enough to absorb
    # MXU/XLA matmul-precision differences and the optional bf16 phi1 stage).
    ref = _reference(x, w1, b1, w2, b2, wr, br)
    tol = 1e-1 if phi1_dt == jnp.bfloat16 else 5e-2
    max_err = float(jnp.max(jnp.abs(out - ref)))
    scale = max(float(jnp.max(jnp.abs(ref))), 1.0)
    assert max_err <= tol * scale, (max_err, scale)

    print("KERNEL_OK")
</pallas_src>

<mosaic_0001>
module attributes {stable_mosaic.version = 11 : i64} {
  func.func @_distnet_kernel(%arg0: i32, %arg1: memref<2x16x3xf32, #tpu.memory_space<vmem>>, %arg2: memref<72x128xf32, #tpu.memory_space<vmem>>, %arg3: memref<2x4xf32, #tpu.memory_space<vmem>>, %arg4: memref<32x16x1xf32, #tpu.memory_space<vmem>>) attributes {dimension_semantics = [#tpu.dimension_semantics<arbitrary>], iteration_bounds = array<i64: 1>, scalar_prefetch = 0 : i64, scratch_operands = 1 : i64, tpu.core_type = #tpu.core_type<tc>, window_params = [{pipeline_mode = #tpu.pipeline_mode<synchronous>, transform_indices = @transform_0, window_bounds = array<i64: 2, 16, 3>}, {pipeline_mode = #tpu.pipeline_mode<synchronous>, transform_indices = @transform_1, window_bounds = array<i64: 72, 128>}, {pipeline_mode = #tpu.pipeline_mode<synchronous>, transform_indices = @transform_2, window_bounds = array<i64: 2, 4>}]} {
    %c0 = arith.constant 0 : index
    %c0_0 = arith.constant 0 : index
    %c0_1 = arith.constant 0 : index
    %0 = vector.load %arg1[%c0, %c0_0, %c0_1] : memref<2x16x3xf32, #tpu.memory_space<vmem>>, vector<2x16x3xf32>
    %c0_2 = arith.constant 0 : index
    %c0_3 = arith.constant 0 : index
    %1 = vector.load %arg2[%c0_2, %c0_3] : memref<72x128xf32, #tpu.memory_space<vmem>>, vector<32x32xf32>
    %c32 = arith.constant 32 : index
    %c0_4 = arith.constant 0 : index
    %2 = vector.load %arg2[%c32, %c0_4] : memref<72x128xf32, #tpu.memory_space<vmem>>, vector<32x4xf32>
    %c64 = arith.constant 64 : index
    %c0_5 = arith.constant 0 : index
    %3 = vector.load %arg2[%c64, %c0_5] : memref<72x128xf32, #tpu.memory_space<vmem>>, vector<1x32xf32>
    %c65 = arith.constant 65 : index
    %c0_6 = arith.constant 0 : index
    %4 = vector.load %arg2[%c65, %c0_6] : memref<72x128xf32, #tpu.memory_space<vmem>>, vector<1x32xf32>
    %c66 = arith.constant 66 : index
    %c0_7 = arith.constant 0 : index
    %5 = vector.load %arg2[%c66, %c0_7] : memref<72x128xf32, #tpu.memory_space<vmem>>, vector<1x32xf32>
    %c67 = arith.constant 67 : index
    %c0_8 = arith.constant 0 : index
    %6 = vector.load %arg2[%c67, %c0_8] : memref<72x128xf32, #tpu.memory_space<vmem>>, vector<1x4xf32>
    %7 = vector.extract_strided_slice %0 {offsets = [0, 0, 0], sizes = [1, 16, 3], strides = [1, 1, 1]} : vector<2x16x3xf32> to vector<1x16x3xf32>
    %8 = vector.shape_cast %7 : vector<1x16x3xf32> to vector<16x3xf32>
    %cst = arith.constant 0.000000e+00 : f32
    %9 = vector.broadcast %cst : f32 to vector<16x16xf32>
    %10 = vector.extract_strided_slice %8 {offsets = [0, 0], sizes = [16, 1], strides = [1, 1]} : vector<16x3xf32> to vector<16x1xf32>
    %11 = tpu.transpose %10, [1, 0] : vector<16x1xf32> -> vector<1x16xf32>
    %12 = vector.broadcast %10 : vector<16x1xf32> to vector<16x16xf32>
    %13 = vector.broadcast %11 : vector<1x16xf32> to vector<16x16xf32>
    %14 = arith.subf %12, %13 : vector<16x16xf32>
    %15 = arith.mulf %14, %14 : vector<16x16xf32>
    %16 = arith.addf %9, %15 : vector<16x16xf32>
    %17 = vector.extract_strided_slice %8 {offsets = [0, 1], sizes = [16, 1], strides = [1, 1]} : vector<16x3xf32> to vector<16x1xf32>
    %18 = tpu.transpose %17, [1, 0] : vector<16x1xf32> -> vector<1x16xf32>
    %19 = vector.broadcast %17 : vector<16x1xf32> to vector<16x16xf32>
    %20 = vector.broadcast %18 : vector<1x16xf32> to vector<16x16xf32>
    %21 = arith.subf %19, %20 : vector<16x16xf32>
    %22 = arith.mulf %21, %21 : vector<16x16xf32>
    %23 = arith.addf %16, %22 : vector<16x16xf32>
    %24 = vector.extract_strided_slice %8 {offsets = [0, 2], sizes = [16, 1], strides = [1, 1]} : vector<16x3xf32> to vector<16x1xf32>
    %25 = tpu.transpose %24, [1, 0] : vector<16x1xf32> -> vector<1x16xf32>
    %26 = vector.broadcast %24 : vector<16x1xf32> to vector<16x16xf32>
    %27 = vector.broadcast %25 : vector<1x16xf32> to vector<16x16xf32>
    %28 = arith.subf %26, %27 : vector<16x16xf32>
    %29 = arith.mulf %28, %28 : vector<16x16xf32>
    %30 = arith.addf %23, %29 : vector<16x16xf32>
    %31 = math.sqrt %30 : vector<16x16xf32>
    %32 = vector.shape_cast %31 : vector<16x16xf32> to vector<16x16x1xf32>
    %c0_9 = arith.constant 0 : index
    %c0_10 = arith.constant 0 : index
    %c0_11 = arith.constant 0 : index
    %33 = vector.load %arg4[%c0_9, %c0_10, %c0_11] : memref<32x16x1xf32, #tpu.memory_space<vmem>>, vector<16x16x1xf32>
    tpu.vector_store %arg4[%c0_9, %c0_10, %c0_11], %32 {strides = array<i32>} : memref<32x16x1xf32, #tpu.memory_space<vmem>>, vector<16x16x1xf32>,
    %34 = vector.extract_strided_slice %0 {offsets = [1, 0, 0], sizes = [1, 16, 3], strides = [1, 1, 1]} : vector<2x16x3xf32> to vector<1x16x3xf32>
    %35 = vector.shape_cast %34 : vector<1x16x3xf32> to vector<16x3xf32>
    %cst_12 = arith.constant 0.000000e+00 : f32
    %36 = vector.broadcast %cst_12 : f32 to vector<16x16xf32>
    %37 = vector.extract_strided_slice %35 {offsets = [0, 0], sizes = [16, 1], strides = [1, 1]} : vector<16x3xf32> to vector<16x1xf32>
    %38 = tpu.transpose %37, [1, 0] : vector<16x1xf32> -> vector<1x16xf32>
    %39 = vector.broadcast %37 : vector<16x1xf32> to vector<16x16xf32>
    %40 = vector.broadcast %38 : vector<1x16xf32> to vector<16x16xf32>
    %41 = arith.subf %39, %40 : vector<16x16xf32>
    %42 = arith.mulf %41, %41 : vector<16x16xf32>
    %43 = arith.addf %36, %42 : vector<16x16xf32>
    %44 = vector.extract_strided_slice %35 {offsets = [0, 1], sizes = [16, 1], strides = [1, 1]} : vector<16x3xf32> to vector<16x1xf32>
    %45 = tpu.transpose %44, [1, 0] : vector<16x1xf32> -> vector<1x16xf32>
    %46 = vector.broadcast %44 : vector<16x1xf32> to vector<16x16xf32>
    %47 = vector.broadcast %45 : vector<1x16xf32> to vector<16x16xf32>
    %48 = arith.subf %46, %47 : vector<16x16xf32>
    %49 = arith.mulf %48, %48 : vector<16x16xf32>
    %50 = arith.addf %43, %49 : vector<16x16xf32>
    %51 = vector.extract_strided_slice %35 {offsets = [0, 2], sizes = [16, 1], strides = [1, 1]} : vector<16x3xf32> to vector<16x1xf32>
    %52 = tpu.transpose %51, [1, 0] : vector<16x1xf32> -> vector<1x16xf32>
    %53 = vector.broadcast %51 : vector<16x1xf32> to vector<16x16xf32>
    %54 = vector.broadcast %52 : vector<1x16xf32> to vector<16x16xf32>
    %55 = arith.subf %53, %54 : vector<16x16xf32>
    %56 = arith.mulf %55, %55 : vector<16x16xf32>
    %57 = arith.addf %50, %56 : vector<16x16xf32>
    %58 = math.sqrt %57 : vector<16x16xf32>
    %59 = vector.shape_cast %58 : vector<16x16xf32> to vector<16x16x1xf32>
    %c16 = arith.constant 16 : index
    %c0_13 = arith.constant 0 : index
    %c0_14 = arith.constant 0 : index
    %60 = vector.load %arg4[%c16, %c0_13, %c0_14] : memref<32x16x1xf32, #tpu.memory_space<vmem>>, vector<16x16x1xf32>
    tpu.vector_store %arg4[%c16, %c0_13, %c0_14], %59 {strides = array<i32>} : memref<32x16x1xf32, #tpu.memory_space<vmem>>, vector<16x16x1xf32>,
    %c0_15 = arith.constant 0 : index
    %c0_16 = arith.constant 0 : index
    %c0_17 = arith.constant 0 : index
    %61 = vector.load %arg4[%c0_15, %c0_16, %c0_17] : memref<32x16x1xf32, #tpu.memory_space<vmem>>, vector<32x16x1xf32>
    %62 = vector.shape_cast %61 : vector<32x16x1xf32> to vector<512x1xf32>
    %63 = vector.broadcast %62 : vector<512x1xf32> to vector<512x32xf32>
    %64 = vector.broadcast %3 : vector<1x32xf32> to vector<512x32xf32>
    %65 = arith.mulf %63, %64 : vector<512x32xf32>
    %66 = vector.broadcast %4 : vector<1x32xf32> to vector<512x32xf32>
    %67 = arith.addf %65, %66 : vector<512x32xf32>
    %cst_18 = arith.constant 0.000000e+00 : f32
    %68 = vector.broadcast %cst_18 : f32 to vector<512x32xf32>
    %69 = arith.maximumf %67, %68 : vector<512x32xf32>
    %70 = vector.shape_cast %69 : vector<512x32xf32> to vector<32x16x32xf32>
    %cst_19 = arith.constant dense<0.000000e+00> : vector<32x32xf32>
    %71 = vector.multi_reduction <add>, %70, %cst_19 [1] : vector<32x16x32xf32> to vector<32x32xf32>
    %cst_20 = arith.constant dense<0.000000e+00> : vector<32x32xf32>
    %72 = tpu.matmul %71, %1, %cst_20 {dimension_numbers = #tpu.dot_dimension_numbers<[1], [0], [0], [1], [0, 0, 1, 1], [], []>} : vector<32x32xf32>, vector<32x32xf32>, vector<32x32xf32> -> vector<32x32xf32>
    %73 = vector.broadcast %5 : vector<1x32xf32> to vector<32x32xf32>
    %74 = arith.addf %72, %73 : vector<32x32xf32>
    %cst_21 = arith.constant 0.000000e+00 : f32
    %75 = vector.broadcast %cst_21 : f32 to vector<32x32xf32>
    %76 = arith.maximumf %74, %75 : vector<32x32xf32>
    %77 = vector.shape_cast %76 : vector<32x32xf32> to vector<2x16x32xf32>
    %cst_22 = arith.constant dense<0.000000e+00> : vector<2x32xf32>
    %78 = vector.multi_reduction <add>, %77, %cst_22 [1] : vector<2x16x32xf32> to vector<2x32xf32>
    %cst_23 = arith.constant dense<0.000000e+00> : vector<2x4xf32>
    %79 = tpu.matmul %78, %2, %cst_23 {dimension_numbers = #tpu.dot_dimension_numbers<[1], [0], [0], [1], [0, 0, 1, 1], [], []>} : vector<2x32xf32>, vector<32x4xf32>, vector<2x4xf32> -> vector<2x4xf32>
    %80 = vector.broadcast %6 : vector<1x4xf32> to vector<2x4xf32>
    %81 = arith.addf %79, %80 : vector<2x4xf32>
    %c0_24 = arith.constant 0 : index
    %c0_25 = arith.constant 0 : index
    %82 = vector.load %arg3[%c0_24, %c0_25] : memref<2x4xf32, #tpu.memory_space<vmem>>, vector<2x4xf32>
    tpu.vector_store %arg3[%c0_24, %c0_25], %81 {strides = array<i32>} : memref<2x4xf32, #tpu.memory_space<vmem>>, vector<2x4xf32>,
    return
  }
  func.func @transform_0(%arg0: i32) -> (i32, i32, i32) {
    %c0_i32 = arith.constant 0 : i32
    %c0_i32_0 = arith.constant 0 : i32
    %c0_i32_1 = arith.constant 0 : i32
    %c0_i32_2 = arith.constant 0 : i32
    return %c0_i32, %c0_i32_0, %c0_i32_1 : i32, i32, i32
  }
  func.func @transform_1(%arg0: i32) -> (i32, i32) {
    %c0_i32 = arith.constant 0 : i32
    %c0_i32_0 = arith.constant 0 : i32
    %c0_i32_1 = arith.constant 0 : i32
    return %c0_i32, %c0_i32_0 : i32, i32
  }
  func.func @transform_2(%arg0: i32) -> (i32, i32) {
    %c0_i32 = arith.constant 0 : i32
    %c0_i32_0 = arith.constant 0 : i32
    %c0_i32_1 = arith.constant 0 : i32
    return %c0_i32, %c0_i32_0 : i32, i32
  }
}

</mosaic_0001>

<bundles_post_ra>
// kernel: distnet_forward.1
= control target key start
LH: loop header
LB: loop body
LE: loop exit
PB: predicated region body
PF: predicated region fallthrough
CT: control target
= control target key end

     0   :  { %s2070_s11 = smov 126   ;;  %s2071_s12 = smov 127   ;;  %s2579_s0 = inlined_call_operand.vmem [shape: f32[2,16,3], index: 0, kind: input, shape index: {}]   ;;  %s2580_s1 = inlined_call_operand.vmem [shape: f32[72,128], index: 1, kind: input, shape index: {}]   ;;  %s2581_s2 = inlined_call_operand.hbm [shape: f32[2,4], index: 2, kind: output, shape index: {}]  }
   0x1   :  { %v12_v0 = vld [vmem:[%s2579_s0] sm:$0xff] }
   0x2   :  { %136 = vrot.lane.b32.xlu1 %v12_v0, %s2070_s11  ;;  %80 = vrot.lane.b32.xlu0 %v12_v0, %s2071_s12 }
   0x3   :  { %7 = vsyncpa [#allocation4], 0  ;;  %v13_v1 = vld [vmem:[%s2579_s0 + $0x8] sm:$0xff]  ;;  %v2072_v2 = vmov 0   ;;  %v2073_v3 = vmov 1   ;;  %v14_v4 = vld [vmem:[%s2579_s0 + $0x10] sm:$0xff]  ;;  %v70_v24 = vlaneseq }
   0x4   :  { %2026 = vset.pattern.permute.xlu0 %v2072_v2  ;;  %2027 = vset.pattern.permute.xlu1 %v2073_v3  ;;  %v15_v5 = vld [vmem:[%s2579_s0 + $0x18] sm:$0xff]  ;;  %v2074_v6 = vmov 2   ;;  %vm382_vm8 = vcmask 7168   ;;  %vm1386_vm9 = vcmask 261120   ;;  %vm1711_vm10 = vcmask 1041409   ;;  %s2078_s18 = smov [#allocation3]  }
   0x5   :  { %v2110_v26 = vshrl.u32 %v70_v24, 7  ;;  %vm1713_vm11 = vcmask 1042434   ;;  %vm1715_vm12 = vcmask 1043459   ;;  %vm1717_vm13 = vcmask 1044484   ;;  %s1948_s0 = sshll.u32 %s2078_s18, 4  ;;  %s1949_s0 = int_to_ptr.vmem [resolvable:$true] %s1948_s0 }
   0x6   :  { %138 = vrot.lane.b32.xlu1 %v13_v1, %s2070_s11  ;;  %82 = vrot.lane.b32.xlu0 %v13_v1, %s2071_s12  ;;  %vm1719_vm14 = vcmask 1045509   ;;  %vm1721_vm15 = vcmask 1046534   ;;  %s2046_s19 = scalar_lea.vmem %s1949_s0, 32  ;;  %p2051_p1 = scmp.lt.s32.totalorder %s1949_s0, %s1949_s0 }
   0x7   :  { %v2113_v29 = vsub.s32 0, %v2110_v26  ;;  %p2047_p0 = scmp.ne.s32.totalorder %s1949_s0, %s2046_s19  ;;  %p2052_p2 = scmp.lt.s32.totalorder %s2046_s19, %s2046_s19 }
   0x9   :  { %p2053_p3 = por %p2052_p2, %p2051_p1 }
   0xa   :  { %467 = vrot.lane.b32.xlu0 %v14_v4, %s2071_s12  ;;  %469 = vrot.lane.b32.xlu1 %v15_v5, %s2071_s12 }
   0xb   :  { %p2054_p4 = pnand %p2053_p3, %p2047_p0 }
   0xe   :  { %523 = vrot.lane.b32.xlu0 %v14_v4, %s2070_s11  ;;  %525 = vrot.lane.b32.xlu1 %v15_v5, %s2070_s11 }
  0x12   :  { %62 = vperm.xlu0 %2026, %v12_v0   ;;  %119 = vperm.xlu1 %2027, %v12_v0  }
  0x16   :  { %449 = vperm.xlu0 %2026, %v14_v4   ;;  %2028 = vset.pattern.permute.xlu1 %v2072_v2 }
  0x17   :  { %67 = vperm.xlu1 %2028, %v13_v1  }
  0x1a   :  { %2030 = vset.pattern.permute.xlu0 %v2073_v3 }
  0x1b   :  { %123 = vperm.xlu0 %2030, %v13_v1   ;;  %2029 = vset.pattern.permute.xlu1 %v2074_v6 }
  0x1c   :  { %175 = vperm.xlu1 %2029, %v12_v0  }
  0x1f   :  { %510 = vperm.xlu0 %2030, %v15_v5  }
  0x20   :  { %179 = vperm.xlu1 %2029, %v13_v1  }
  0x24   :  { %2031 = vset.pattern.permute.xlu1 %v2073_v3 }
  0x25   :  { %506 = vperm.xlu1 %2031, %v14_v4  }
  0x29   :  { %2032 = vset.pattern.permute.xlu1 %v2072_v2 }
  0x2a   :  { %454 = vperm.xlu1 %2032, %v15_v5  }
  0x2e   :  { %2033 = vset.pattern.permute.xlu1 %v2074_v6 }
  0x2f   :  { %562 = vperm.xlu1 %2033, %v14_v4  }
  0x33   :  { %566 = vperm.xlu1 %2033, %v15_v5  }
  0x3d   :  { %28 = vxpose.xlu0.b32.start [1/2] (short) (narrow) %v12_v0, 8 }
  0x41   :  { %29 = vxpose.xlu0.b32.end [2/2] (short) (narrow) %v13_v1, 8 }
  0x45   :  { %415 = vxpose.xlu0.b32.start [1/2] (short) (narrow) %v14_v4, 8 }
  0x49   :  { %416 = vxpose.xlu0.b32.end [2/2] (short) (narrow) %v15_v5, 8  ;;  %v2128_v5 = vsub.s32 1, %v2110_v26 }
  0x74   :  { %v137_v7 = vpop.permute.xlu1 %136  ;;  %v81_v8 = vpop.permute.xlu0 %80 }
  0x75   :  { %142 = vxpose.xlu0.b32.start [1/2] (short) (narrow) %v137_v7, 8  ;;  %86 = vxpose.xlu1.b32.start [1/2] (short) (narrow) %v81_v8, 8 }
  0x78   :  { %v139_v9 = vpop.permute.xlu1 %138  ;;  %v83_v10 = vpop.permute.xlu0 %82 }
  0x79   :  { %143 = vxpose.xlu0.b32.end [2/2] (short) (narrow) %v139_v9, 8  ;;  %87 = vxpose.xlu1.b32.end [2/2] (short) (narrow) %v83_v10, 8 }
  0x7c   :  { %v468_v11 = vpop.permute.xlu0 %467  ;;  %v470_v12 = vpop.permute.xlu1 %469 }
  0x7d   :  { %473 = vxpose.xlu1.b32.start [1/2] (short) (narrow) %v468_v11, 8 }
  0x80   :  { %v524_v13 = vpop.permute.xlu0 %523  ;;  %v526_v14 = vpop.permute.xlu1 %525 }
  0x81   :  { %474 = vxpose.xlu1.b32.end [2/2] (short) (narrow) %v470_v12, 8  ;;  %529 = vxpose.xlu0.b32.start [1/2] (short) (narrow) %v524_v13, 8 }
  0x85   :  { %530 = vxpose.xlu0.b32.end [2/2] (short) (narrow) %v526_v14, 8 }
  0x91   :  { %v120_v15 = vpop.permute.xlu1 %119  ;;  %v63_v17 = vpop.permute.xlu0 %62 }
  0x95   :  { %v450_v19 = vpop.permute.xlu0 %449 }
  0x96   :  { %v68_v16 = vpop.permute.xlu1 %67 }
  0x9a   :  { %v124_v22 = vpop.permute.xlu0 %123 }
  0x9b   :  { %v176_v18 = vpop.permute.xlu1 %175 }
  0x9e   :  { %v2108_v25 = vpop.permute.xlu0 %510 }
  0x9f   :  { %2035 = vset.pattern.permute.xlu1 %v2072_v2  ;;  %v180_v20 = vpop.permute.xlu1 %179 }
  0xa4   :  { %v507_v21 = vpop.permute.xlu1 %506 }
  0xa9   :  { %v2106_v23 = vpop.permute.xlu1 %454 }
  0xae   :  { %2034 = vset.pattern.permute.xlu0 %v2072_v2  ;;  %v563_v27 = vpop.permute.xlu1 %562 }
  0xb2   :  { %v2115_v31 = vpop.permute.xlu1 %566 }
  0xbd   :  { %v44_v28 = vpop.trf.xlu0 }
  0xbe   :  { %v73_v32 = vrot.slane %v44_v28, %v2113_v29 }
  0xc0   :  { %v74_v35 = vsub.f32 %v63_v17, %v73_v32  ;;  %v75_v36 = vsub.f32 %v68_v16, %v73_v32  ;;  %v2139_v16 = vsub.s32 3, %v2110_v26  ;;  %v2142_v17 = vsub.s32 2, %v2110_v26 }
  0xc2   :  { %v76_v43 = vmul.f32 %v74_v35, %v74_v35  ;;  %v77_v44 = vmul.f32 %v75_v36, %v75_v36  ;;  %v2161_v35 = vsub.s32 5, %v2110_v26 }
  0xc5   :  { %v431_v30 = vpop.trf.xlu0 }
  0xc6   :  { %v460_v58 = vrot.slane %v431_v30, %v2113_v29 }
  0xc8   :  { %v461_v6 = vsub.f32 %v450_v19, %v460_v58  ;;  %v462_v28 = vsub.f32 %v2106_v23, %v460_v58 }
  0xca   :  { %v463_v12 = vmul.f32 %v461_v6, %v461_v6  ;;  %v464_v36 = vmul.f32 %v462_v28, %v462_v28 }
  0xf5   :  { %v102_v33 = vpop.trf.xlu1  ;;  %v158_v34 = vpop.trf.xlu0 }
  0xf6   :  { %v129_v37 = vrot.slane %v102_v33, %v2113_v29  ;;  %v185_v38 = vrot.slane %v158_v34, %v2113_v29 }
  0xf8   :  { %v130_v39 = vsub.f32 %v120_v15, %v129_v37  ;;  %v131_v40 = vsub.f32 %v124_v22, %v129_v37  ;;  %v186_v41 = vsub.f32 %v176_v18, %v185_v38  ;;  %v187_v42 = vsub.f32 %v180_v20, %v185_v38 }
  0xf9   :  { %v2151_v22 = vsub.s32 4, %v2110_v26 }
  0xfa   :  { %v132_v45 = vmul.f32 %v130_v39, %v130_v39  ;;  %v133_v46 = vmul.f32 %v131_v40, %v131_v40  ;;  %v188_v49 = vmul.f32 %v186_v41, %v186_v41  ;;  %v189_v50 = vmul.f32 %v187_v42, %v187_v42 }
  0xfc   :  { %v134_v47 = vadd.f32 %v132_v45, %v76_v43  ;;  %v135_v48 = vadd.f32 %v133_v46, %v77_v44  ;;  %v274_v45 = vsub.s32 6, %v2110_v26 }
  0xfd   :  { %v489_v53 = vpop.trf.xlu1 }
  0xfe   :  { %v190_v51 = vadd.f32 %v188_v49, %v134_v47  ;;  %v191_v52 = vadd.f32 %v189_v50, %v135_v48  ;;  %v516_v56 = vrot.slane %v489_v53, %v2113_v29 }
 0x100   :  { %2036 = vrsqrt.f32 %v190_v51  ;;  %vm194_vm0 = vcmp.eq.f32.partialorder %v190_v51, inf  ;;  %v197_v61 = vand.u32 2147483648, %v190_v51  ;;  %vm196_vm1 = vcmp.eq.f32.partialorder %v190_v51, 0.0 }
 0x101   :  { %2038 = vrsqrt.f32 %v191_v52  ;;  %v545_v54 = vpop.trf.xlu0  ;;  %vm201_vm2 = vcmp.eq.f32.partialorder %v191_v52, inf  ;;  %v517_v0 = vsub.f32 %v507_v21, %v516_v56  ;;  %v204_v3 = vand.u32 2147483648, %v191_v52 }
 0x102   :  { %v572_v60 = vrot.slane %v545_v54, %v2113_v29  ;;  %vm203_vm3 = vcmp.eq.f32.partialorder %v191_v52, 0.0  ;;  %v518_v24 = vsub.f32 %v2108_v25, %v516_v56  ;;  %v285_v56 = vsub.s32 7, %v2110_v26 }
 0x103   :  { %v519_v9 = vmul.f32 %v517_v0, %v517_v0 }
 0x104   :  { %v573_v7 = vsub.f32 %v563_v27, %v572_v60  ;;  %v574_v30 = vsub.f32 %v2115_v31, %v572_v60  ;;  %v520_v33 = vmul.f32 %v518_v24, %v518_v24 }
 0x105   :  { %v521_v14 = vadd.f32 %v519_v9, %v463_v12 }
 0x106   :  { %v575_v13 = vmul.f32 %v573_v7, %v573_v7  ;;  %v576_v37 = vmul.f32 %v574_v30, %v574_v30  ;;  %v522_v38 = vadd.f32 %v520_v33, %v464_v36 }
 0x108   :  { %v577_v18 = vadd.f32 %v575_v13, %v521_v14  ;;  %v578_v31 = vadd.f32 %v576_v37, %v522_v38 }
 0x10a   :  { %v2037_v55 = vpop.eup %2036  ;;  %2040 = vrsqrt.f32 %v577_v18  ;;  %vm581_vm4 = vcmp.eq.f32.partialorder %v577_v18, inf  ;;  %v584_v40 = vand.u32 2147483648, %v577_v18  ;;  %vm583_vm5 = vcmp.eq.f32.partialorder %v577_v18, 0.0 }
 0x10b   :  { %v2039_v57 = vpop.eup %2038  ;;  %v193_v59 = vmul.f32 %v2037_v55, %v190_v51  ;;  %2042 = vrsqrt.f32 %v578_v31  ;;  %vm588_vm6 = vcmp.eq.f32.partialorder %v578_v31, inf  ;;  %vm590_vm7 = vcmp.eq.f32.partialorder %v578_v31, 0.0 }
 0x10c   :  { %v200_v62 = vmul.f32 %v2039_v57, %v191_v52 }
 0x10d   :  { %v195_v63 = vsel %vm194_vm0, %v190_v51, %v193_v59  ;;  %v591_v51 = vand.u32 2147483648, %v578_v31  ;;  %vm1723_vm0 = vcmask 1047559  }
 0x10e   :  { %v2123_v1 = vsel %vm196_vm1, %v197_v61, %v195_v63  ;;  %v202_v2 = vsel %vm201_vm2, %v191_v52, %v200_v62  ;;  %vm2076_vm1 = vmmov 0   ;;  %vm1940_vm2 = vcmask 25600  }
 0x10f   :  { %v209_v4 = vrot.slane %v2123_v1, %v2113_v29  ;;  %v2130_v8 = vsel %vm203_vm3, %v204_v3, %v202_v2  ;;  %v220_v11 = vrot.slane %v2123_v1, %v2128_v5  ;;  %v242_v19 = vrot.slane %v2123_v1, %v2139_v16 }
 0x110   :  { %v297_v10 = vrot.slane %v2130_v8, %v2113_v29  ;;  %v308_v15 = vrot.slane %v2130_v8, %v2128_v5  ;;  %v231_v20 = vrot.slane %v2123_v1, %v2142_v17  ;;  %v319_v21 = vrot.slane %v2130_v8, %v2142_v17 }
 0x111   :  { %215 = vbcast.lane.b32.xlu0 %v209_v4, 264  ;;  %211 = vbcast.lane.b32.xlu1 %v209_v4, 256  ;;  %v253_v27 = vrot.slane %v2123_v1, %v2151_v22  ;;  %v330_v34 = vrot.slane %v2130_v8, %v2139_v16  ;;  %v264_v23 = vrot.slane %v2123_v1, %v2161_v35 }
 0x112   :  { %v341_v41 = vrot.slane %v2130_v8, %v2151_v22  ;;  %v275_v47 = vrot.slane %v2123_v1, %v274_v45  ;;  %v352_v49 = vrot.slane %v2130_v8, %v2161_v35  ;;  %v286_v57 = vrot.slane %v2123_v1, %v285_v56 }
 0x113   :  { %v363_v58 = vrot.slane %v2130_v8, %v274_v45  ;;  %v374_v26 = vrot.slane %v2130_v8, %v285_v56 }
 0x114   :  { %v2041_v32 = vpop.eup %2040 }
 0x115   :  { %299 = vbcast.lane.b32.xlu0 %v297_v10, 256  ;;  %222 = vbcast.lane.b32.xlu1 %v220_v11, 256  ;;  %v580_v25 = vmul.f32 %v2041_v32, %v577_v18  ;;  %v2043_v46 = vpop.eup %2042 }
 0x116   :  { %v587_v48 = vmul.f32 %v2043_v46, %v578_v31 }
 0x117   :  { %v582_v39 = vsel %vm581_vm4, %v577_v18, %v580_v25 }
 0x118   :  { %v2167_v42 = vsel %vm583_vm5, %v584_v40, %v582_v39  ;;  %v589_v50 = vsel %vm588_vm6, %v578_v31, %v587_v48 }
 0x119   :  { %310 = vbcast.lane.b32.xlu0 %v308_v15, 256  ;;  %226 = vbcast.lane.b32.xlu1 %v220_v11, 264  ;;  %v596_v43 = vrot.slane %v2167_v42, %v2113_v29  ;;  %v607_v44 = vrot.slane %v2167_v42, %v2128_v5  ;;  %v618_v52 = vrot.slane %v2167_v42, %v2142_v17 }
 0x11a   :  { %v592_v53 = vsel %vm590_vm7, %v591_v51, %v589_v50  ;;  %v629_v59 = vrot.slane %v2167_v42, %v2139_v16  ;;  %v640_v60 = vrot.slane %v2167_v42, %v2151_v22  ;;  %v651_v62 = vrot.slane %v2167_v42, %v2161_v35 }
 0x11b   :  { %v684_v54 = vrot.slane %v592_v53, %v2113_v29  ;;  %v695_v55 = vrot.slane %v592_v53, %v2128_v5  ;;  %v706_v29 = vrot.slane %v592_v53, %v2142_v17  ;;  %v717_v61 = vrot.slane %v592_v53, %v2139_v16 }
 0x11c   :  { %v728_v63 = vrot.slane %v592_v53, %v2151_v22  ;;  %v662_v0 = vrot.slane %v2167_v42, %v274_v45  ;;  %v739_v1 = vrot.slane %v592_v53, %v2161_v35  ;;  %v673_v2 = vrot.slane %v2167_v42, %v285_v56 }
 0x11d   :  { %244 = vbcast.lane.b32.xlu0 %v242_v19, 256  ;;  %233 = vbcast.lane.b32.xlu1 %v231_v20, 256  ;;  %v750_v3 = vrot.slane %v592_v53, %v274_v45  ;;  %v761_v6 = vrot.slane %v592_v53, %v285_v56 }
 0x121   :  { %321 = vbcast.lane.b32.xlu0 %v319_v21, 256  ;;  %237 = vbcast.lane.b32.xlu1 %v231_v20, 264 }
 0x125   :  { %255 = vbcast.lane.b32.xlu0 %v253_v27, 256  ;;  %303 = vbcast.lane.b32.xlu1 %v297_v10, 264 }
 0x129   :  { %332 = vbcast.lane.b32.xlu0 %v330_v34, 256  ;;  %314 = vbcast.lane.b32.xlu1 %v308_v15, 264 }
 0x12d   :  { %266 = vbcast.lane.b32.xlu0 %v264_v23, 256  ;;  %248 = vbcast.lane.b32.xlu1 %v242_v19, 264 }
 0x131   :  { %343 = vbcast.lane.b32.xlu0 %v341_v41, 256  ;;  %325 = vbcast.lane.b32.xlu1 %v319_v21, 264 }
 0x135   :  { %259 = vbcast.lane.b32.xlu1 %v253_v27, 264  ;;  %598 = vbcast.lane.b32.xlu0 %v596_v43, 256 }
 0x139   :  { %336 = vbcast.lane.b32.xlu1 %v330_v34, 264  ;;  %609 = vbcast.lane.b32.xlu0 %v607_v44, 256 }
 0x13d   :  { %270 = vbcast.lane.b32.xlu1 %v264_v23, 264  ;;  %277 = vbcast.lane.b32.xlu0 %v275_v47, 256 }
 0x141   :  { %347 = vbcast.lane.b32.xlu1 %v341_v41, 264  ;;  %354 = vbcast.lane.b32.xlu0 %v352_v49, 256 }
 0x145   :  { %602 = vbcast.lane.b32.xlu1 %v596_v43, 264  ;;  %620 = vbcast.lane.b32.xlu0 %v618_v52, 256 }
 0x149   :  { %613 = vbcast.lane.b32.xlu1 %v607_v44, 264  ;;  %686 = vbcast.lane.b32.xlu0 %v684_v54, 256 }
 0x14d   :  { %281 = vbcast.lane.b32.xlu1 %v275_v47, 264  ;;  %697 = vbcast.lane.b32.xlu0 %v695_v55, 256 }
 0x151   :  { %358 = vbcast.lane.b32.xlu1 %v352_v49, 264  ;;  %288 = vbcast.lane.b32.xlu0 %v286_v57, 256 }
 0x155   :  { %624 = vbcast.lane.b32.xlu1 %v618_v52, 264  ;;  %365 = vbcast.lane.b32.xlu0 %v363_v58, 256 }
 0x159   :  { %690 = vbcast.lane.b32.xlu1 %v684_v54, 264  ;;  %631 = vbcast.lane.b32.xlu0 %v629_v59, 256 }
 0x15d   :  { %701 = vbcast.lane.b32.xlu1 %v695_v55, 264  ;;  %708 = vbcast.lane.b32.xlu0 %v706_v29, 256 }
 0x161   :  { %292 = vbcast.lane.b32.xlu1 %v286_v57, 264  ;;  %376 = vbcast.lane.b32.xlu0 %v374_v26, 256 }
 0x165   :  { %369 = vbcast.lane.b32.xlu1 %v363_v58, 264  ;;  %642 = vbcast.lane.b32.xlu0 %v640_v60, 256 }
 0x169   :  { %635 = vbcast.lane.b32.xlu1 %v629_v59, 264  ;;  %719 = vbcast.lane.b32.xlu0 %v717_v61, 256 }
 0x16d   :  { %712 = vbcast.lane.b32.xlu1 %v706_v29, 264  ;;  %653 = vbcast.lane.b32.xlu0 %v651_v62, 256 }
 0x171   :  { %380 = vbcast.lane.b32.xlu1 %v374_v26, 264  ;;  %730 = vbcast.lane.b32.xlu0 %v728_v63, 256 }
 0x175   :  { %646 = vbcast.lane.b32.xlu1 %v640_v60, 264  ;;  %664 = vbcast.lane.b32.xlu0 %v662_v0, 256 }
 0x179   :  { %723 = vbcast.lane.b32.xlu1 %v717_v61, 264  ;;  %741 = vbcast.lane.b32.xlu0 %v739_v1, 256 }
 0x17d   :  { %657 = vbcast.lane.b32.xlu1 %v651_v62, 264  ;;  %675 = vbcast.lane.b32.xlu0 %v673_v2, 256 }
 0x181   :  { %734 = vbcast.lane.b32.xlu1 %v728_v63, 264  ;;  %752 = vbcast.lane.b32.xlu0 %v750_v3, 256 }
 0x183   :  { %v212_v4 = vpop.permute.xlu1 %211  ;;  %v216_v5 = vpop.permute.xlu0 %215 }
 0x184   :  { %383 = vst.msk [vmem:[#allocation2] sm:$0xff] %vm382_vm8, %v212_v4  ;;  %384 = vst.msk [vmem:[#allocation2 + $0x8] sm:$0xff] %vm382_vm8, %v216_v5 }
 0x185   :  { %668 = vbcast.lane.b32.xlu1 %v662_v0, 264  ;;  %763 = vbcast.lane.b32.xlu0 %v761_v6, 256 }
 0x187   :  { %v223_v7 = vpop.permute.xlu1 %222  ;;  %v300_v8 = vpop.permute.xlu0 %299 }
 0x188   :  { %385 = vst.msk [vmem:[#allocation2 + $0x10] sm:$0xff] %vm382_vm8, %v223_v7  ;;  %399 = vst.msk [vmem:[#allocation2 + $0x80] sm:$0xff] %vm382_vm8, %v300_v8 }
 0x189   :  { %745 = vbcast.lane.b32.xlu1 %v739_v1, 264 }
 0x18b   :  { %v227_v9 = vpop.permute.xlu1 %226  ;;  %v311_v10 = vpop.permute.xlu0 %310  ;;  %v802_v11 = vld [vmem:[#allocation2] sm:$0xff]  ;;  %v803_v19 = vld [vmem:[#allocation2 + $0x8] sm:$0xff] }
 0x18c   :  { %386 = vst.msk [vmem:[#allocation2 + $0x18] sm:$0xff] %vm382_vm8, %v227_v9  ;;  %401 = vst.msk [vmem:[#allocation2 + $0x90] sm:$0xff] %vm382_vm8, %v311_v10  ;;  %868 = vperm.xlu0 %2034, %v802_v11  }
 0x18d   :  { %679 = vbcast.lane.b32.xlu1 %v673_v2, 264 }
 0x18f   :  { %v234_v12 = vpop.permute.xlu1 %233  ;;  %v245_v13 = vpop.permute.xlu0 %244  ;;  %v804_v24 = vld [vmem:[#allocation2 + $0x10] sm:$0xff]  ;;  %v818_v36 = vld [vmem:[#allocation2 + $0x80] sm:$0xff] }
 0x190   :  { %387 = vst.msk [vmem:[#allocation2 + $0x20] sm:$0xff] %vm382_vm8, %v234_v12  ;;  %389 = vst.msk [vmem:[#allocation2 + $0x30] sm:$0xff] %vm382_vm8, %v245_v13 }
 0x191   :  { %756 = vbcast.lane.b32.xlu1 %v750_v3, 264 }
 0x193   :  { %v238_v14 = vpop.permute.xlu1 %237  ;;  %v322_v15 = vpop.permute.xlu0 %321  ;;  %v805_v16 = vld [vmem:[#allocation2 + $0x18] sm:$0xff]  ;;  %v820_v23 = vld [vmem:[#allocation2 + $0x90] sm:$0xff] }
 0x194   :  { %388 = vst.msk [vmem:[#allocation2 + $0x28] sm:$0xff] %vm382_vm8, %v238_v14  ;;  %403 = vst.msk [vmem:[#allocation2 + $0xa0] sm:$0xff] %vm382_vm8, %v322_v15  ;;  %883 = vperm.xlu0 %2034, %v805_v16  }
 0x195   :  { %767 = vbcast.lane.b32.xlu1 %v761_v6, 264 }
 0x197   :  { %v304_v17 = vpop.permute.xlu1 %303  ;;  %v256_v18 = vpop.permute.xlu0 %255  ;;  %v806_v32 = vld [vmem:[#allocation2 + $0x20] sm:$0xff]  ;;  %v808_v41 = vld [vmem:[#allocation2 + $0x30] sm:$0xff] }
 0x198   :  { %400 = vst.msk [vmem:[#allocation2 + $0x88] sm:$0xff] %vm382_vm8, %v304_v17  ;;  %391 = vst.msk [vmem:[#allocation2 + $0x40] sm:$0xff] %vm382_vm8, %v256_v18 }
 0x199   :  { %873 = vperm.xlu1 %2035, %v803_v19  }
 0x19b   :  { %v315_v20 = vpop.permute.xlu1 %314  ;;  %v333_v21 = vpop.permute.xlu0 %332  ;;  %v807_v22 = vld [vmem:[#allocation2 + $0x28] sm:$0xff]  ;;  %v822_v45 = vld [vmem:[#allocation2 + $0xa0] sm:$0xff] }
 0x19c   :  { %402 = vst.msk [vmem:[#allocation2 + $0x98] sm:$0xff] %vm382_vm8, %v315_v20  ;;  %405 = vst.msk [vmem:[#allocation2 + $0xb0] sm:$0xff] %vm382_vm8, %v333_v21  ;;  %893 = vperm.xlu0 %2034, %v807_v22  }
 0x19d   :  { %878 = vperm.xlu1 %2035, %v804_v24  }
 0x19f   :  { %v249_v27 = vpop.permute.xlu1 %248  ;;  %v267_v28 = vpop.permute.xlu0 %266  ;;  %v819_v30 = vld [vmem:[#allocation2 + $0x88] sm:$0xff]  ;;  %v810_v49 = vld [vmem:[#allocation2 + $0x40] sm:$0xff] }
 0x1a0   :  { %390 = vst.msk [vmem:[#allocation2 + $0x38] sm:$0xff] %vm382_vm8, %v249_v27  ;;  %393 = vst.msk [vmem:[#allocation2 + $0x50] sm:$0xff] %vm382_vm8, %v267_v28  ;;  %953 = vperm.xlu0 %2034, %v819_v30  }
 0x1a1   :  { %888 = vperm.xlu1 %2035, %v806_v32  }
 0x1a3   :  { %v326_v33 = vpop.permute.xlu1 %325  ;;  %v344_v34 = vpop.permute.xlu0 %343  ;;  %v821_v35 = vld [vmem:[#allocation2 + $0x98] sm:$0xff]  ;;  %v824_v53 = vld [vmem:[#allocation2 + $0xb0] sm:$0xff] }
 0x1a4   :  { %404 = vst.msk [vmem:[#allocation2 + $0xa8] sm:$0xff] %vm382_vm8, %v326_v33  ;;  %407 = vst.msk [vmem:[#allocation2 + $0xc0] sm:$0xff] %vm382_vm8, %v344_v34  ;;  %963 = vperm.xlu0 %2034, %v821_v35  }
 0x1a5   :  { %948 = vperm.xlu1 %2035, %v818_v36  }
 0x1a7   :  { %v260_v37 = vpop.permute.xlu1 %259  ;;  %v599_v25 = vpop.permute.xlu0 %598  ;;  %v809_v38 = vld [vmem:[#allocation2 + $0x38] sm:$0xff]  ;;  %v812_v57 = vld [vmem:[#allocation2 + $0x50] sm:$0xff] }
 0x1a8   :  { %392 = vst.msk [vmem:[#allocation2 + $0x48] sm:$0xff] %vm382_vm8, %v260_v37  ;;  %770 = vst.msk [vmem:[#allocation2 + $0x100] sm:$0xff] %vm382_vm8, %v599_v25  ;;  %903 = vperm.xlu0 %2034, %v809_v38  }
 0x1a9   :  { %958 = vperm.xlu1 %2035, %v820_v23  }
 0x1ab   :  { %v337_v31 = vpop.permute.xlu1 %336  ;;  %v610_v39 = vpop.permute.xlu0 %609  ;;  %v823_v40 = vld [vmem:[#allocation2 + $0xa8] sm:$0xff]  ;;  %v826_v26 = vld [vmem:[#allocation2 + $0xc0] sm:$0xff] }
 0x1ac   :  { %406 = vst.msk [vmem:[#allocation2 + $0xb8] sm:$0xff] %vm382_vm8, %v337_v31  ;;  %772 = vst.msk [vmem:[#allocation2 + $0x110] sm:$0xff] %vm382_vm8, %v610_v39  ;;  %973 = vperm.xlu0 %2034, %v823_v40  }
 0x1ad   :  { %898 = vperm.xlu1 %2035, %v808_v41  }
 0x1af   :  { %v271_v42 = vpop.permute.xlu1 %270  ;;  %v278_v43 = vpop.permute.xlu0 %277  ;;  %v811_v44 = vld [vmem:[#allocation2 + $0x48] sm:$0xff]  ;;  %v834_v63 = vld [vmem:[#allocation2 + $0x100] sm:$0xff] }
 0x1b0   :  { %394 = vst.msk [vmem:[#allocation2 + $0x58] sm:$0xff] %vm382_vm8, %v271_v42  ;;  %395 = vst.msk [vmem:[#allocation2 + $0x60] sm:$0xff] %vm382_vm8, %v278_v43  ;;  %913 = vperm.xlu0 %2034, %v811_v44  }
 0x1b1   :  { %968 = vperm.xlu1 %2035, %v822_v45  }
 0x1b3   :  { %v348_v46 = vpop.permute.xlu1 %347  ;;  %v355_v47 = vpop.permute.xlu0 %354  ;;  %v825_v48 = vld [vmem:[#allocation2 + $0xb8] sm:$0xff]  ;;  %v836_v3 = vld [vmem:[#allocation2 + $0x110] sm:$0xff] }
 0x1b4   :  { %408 = vst.msk [vmem:[#allocation2 + $0xc8] sm:$0xff] %vm382_vm8, %v348_v46  ;;  %409 = vst.msk [vmem:[#allocation2 + $0xd0] sm:$0xff] %vm382_vm8, %v355_v47  ;;  %983 = vperm.xlu0 %2034, %v825_v48  }
 0x1b5   :  { %908 = vperm.xlu1 %2035, %v810_v49  }
 0x1b7   :  { %v603_v50 = vpop.permute.xlu1 %602  ;;  %v621_v51 = vpop.permute.xlu0 %620  ;;  %v813_v52 = vld [vmem:[#allocation2 + $0x58] sm:$0xff]  ;;  %v814_v7 = vld [vmem:[#allocation2 + $0x60] sm:$0xff] }
 0x1b8   :  { %771 = vst.msk [vmem:[#allocation2 + $0x108] sm:$0xff] %vm382_vm8, %v603_v50  ;;  %774 = vst.msk [vmem:[#allocation2 + $0x120] sm:$0xff] %vm382_vm8, %v621_v51  ;;  %923 = vperm.xlu0 %2034, %v813_v52  }
 0x1b9   :  { %978 = vperm.xlu1 %2035, %v824_v53  }
 0x1bb   :  { %v614_v54 = vpop.permute.xlu1 %613  ;;  %v687_v55 = vpop.permute.xlu0 %686  ;;  %v827_v56 = vld [vmem:[#allocation2 + $0xc8] sm:$0xff]  ;;  %v828_v11 = vld [vmem:[#allocation2 + $0xd0] sm:$0xff] }
 0x1bc   :  { %773 = vst.msk [vmem:[#allocation2 + $0x118] sm:$0xff] %vm382_vm8, %v614_v54  ;;  %786 = vst.msk [vmem:[#allocation2 + $0x180] sm:$0xff] %vm382_vm8, %v687_v55  ;;  %993 = vperm.xlu0 %2034, %v827_v56  }
 0x1bd   :  { %918 = vperm.xlu1 %2035, %v812_v57  }
 0x1bf   :  { %v282_v58 = vpop.permute.xlu1 %281  ;;  %v698_v59 = vpop.permute.xlu0 %697  ;;  %v835_v29 = vld [vmem:[#allocation2 + $0x108] sm:$0xff]  ;;  %v838_v15 = vld [vmem:[#allocation2 + $0x120] sm:$0xff] }
 0x1c0   :  { %396 = vst.msk [vmem:[#allocation2 + $0x68] sm:$0xff] %vm382_vm8, %v282_v58  ;;  %788 = vst.msk [vmem:[#allocation2 + $0x190] sm:$0xff] %vm382_vm8, %v698_v59  ;;  %1033 = vperm.xlu0 %2034, %v835_v29   ;;  %v16_v29 = vld [vmem:[%s2580_s1] sm:$0xff] }
 0x1c1   :  { %988 = vperm.xlu1 %2035, %v826_v26   ;;  %v17_v26 = vld [vmem:[%s2580_s1 + $0x8] sm:$0xff] }
 0x1c3   :  { %v359_v60 = vpop.permute.xlu1 %358  ;;  %v289_v61 = vpop.permute.xlu0 %288  ;;  %v837_v62 = vld [vmem:[#allocation2 + $0x118] sm:$0xff]  ;;  %v850_v19 = vld [vmem:[#allocation2 + $0x180] sm:$0xff] }
 0x1c4   :  { %410 = vst.msk [vmem:[#allocation2 + $0xd8] sm:$0xff] %vm382_vm8, %v359_v60  ;;  %397 = vst.msk [vmem:[#allocation2 + $0x70] sm:$0xff] %vm382_vm8, %v289_v61  ;;  %1043 = vperm.xlu0 %2034, %v837_v62   ;;  %v2003_v60 = vpack.c.bf16 %v17_v26, %v16_v29 }
 0x1c5   :  { %1028 = vperm.xlu1 %2035, %v834_v63  }
 0x1c6   :  { %2004 = vmatprep.subr.bf16.mxu0 %v2003_v60 }
 0x1c7   :  { %v625_v0 = vpop.permute.xlu1 %624  ;;  %v366_v1 = vpop.permute.xlu0 %365  ;;  %v815_v2 = vld [vmem:[#allocation2 + $0x68] sm:$0xff]  ;;  %v852_v24 = vld [vmem:[#allocation2 + $0x190] sm:$0xff]  ;;  %2006 = vmatpush3.bf16.msra.mxu0 %v2003_v60 }
 0x1c8   :  { %775 = vst.msk [vmem:[#allocation2 + $0x128] sm:$0xff] %vm382_vm8, %v625_v0  ;;  %411 = vst.msk [vmem:[#allocation2 + $0xe0] sm:$0xff] %vm382_vm8, %v366_v1  ;;  %933 = vperm.xlu0 %2034, %v815_v2   ;;  %v18_v0 = vld [vmem:[%s2580_s1 + $0x10] sm:$0xff]  ;;  %v19_v1 = vld [vmem:[%s2580_s1 + $0x18] sm:$0xff] }
 0x1c9   :  { %1038 = vperm.xlu1 %2035, %v836_v3   ;;  %v2007_v2 = vpack.c.bf16 %v19_v1, %v18_v0 }
 0x1cb   :  { %v691_v4 = vpop.permute.xlu1 %690  ;;  %v632_v5 = vpop.permute.xlu0 %631  ;;  %v829_v6 = vld [vmem:[#allocation2 + $0xd8] sm:$0xff]  ;;  %v816_v32 = vld [vmem:[#allocation2 + $0x70] sm:$0xff]  ;;  %2008 = vmatprep.subr.bf16.mxu0 %v2007_v2 }
 0x1cc   :  { %787 = vst.msk [vmem:[#allocation2 + $0x188] sm:$0xff] %vm382_vm8, %v691_v4  ;;  %776 = vst.msk [vmem:[#allocation2 + $0x130] sm:$0xff] %vm382_vm8, %v632_v5  ;;  %1003 = vperm.xlu0 %2034, %v829_v6   ;;  %2010 = vmatpush3.bf16.msra.mxu0 %v2007_v2 }
 0x1cd   :  { %928 = vperm.xlu1 %2035, %v814_v7  }
 0x1cf   :  { %v702_v8 = vpop.permute.xlu1 %701  ;;  %v709_v9 = vpop.permute.xlu0 %708  ;;  %v839_v10 = vld [vmem:[#allocation2 + $0x128] sm:$0xff]  ;;  %v830_v36 = vld [vmem:[#allocation2 + $0xe0] sm:$0xff] }
 0x1d0   :  { %789 = vst.msk [vmem:[#allocation2 + $0x198] sm:$0xff] %vm382_vm8, %v702_v8  ;;  %790 = vst.msk [vmem:[#allocation2 + $0x1a0] sm:$0xff] %vm382_vm8, %v709_v9  ;;  %1053 = vperm.xlu0 %2034, %v839_v10   ;;  %v2276_v9 = vld [vmem:[%s2580_s1 + $0x40] ss:$0 sm:$0xff] }
 0x1d1   :  { %998 = vperm.xlu1 %2035, %v828_v11  }
 0x1d3   :  { %v293_v12 = vpop.permute.xlu1 %292  ;;  %v377_v13 = vpop.permute.xlu0 %376  ;;  %v851_v14 = vld [vmem:[#allocation2 + $0x188] sm:$0xff]  ;;  %v840_v23 = vld [vmem:[#allocation2 + $0x130] sm:$0xff] }
 0x1d4   :  { %398 = vst.msk [vmem:[#allocation2 + $0x78] sm:$0xff] %vm382_vm8, %v293_v12  ;;  %413 = vst.msk [vmem:[#allocation2 + $0xf0] sm:$0xff] %vm382_vm8, %v377_v13  ;;  %1113 = vperm.xlu0 %2034, %v851_v14   ;;  %v2282_v13 = vld [vmem:[%s2580_s1 + $0x41] ss:$0 sm:$0xff] }
 0x1d5   :  { %1048 = vperm.xlu1 %2035, %v838_v15  }
 0x1d7   :  { %v370_v16 = vpop.permute.xlu1 %369  ;;  %v643_v17 = vpop.permute.xlu0 %642  ;;  %v853_v18 = vld [vmem:[#allocation2 + $0x198] sm:$0xff]  ;;  %v854_v41 = vld [vmem:[#allocation2 + $0x1a0] sm:$0xff] }
 0x1d8   :  { %412 = vst.msk [vmem:[#allocation2 + $0xe8] sm:$0xff] %vm382_vm8, %v370_v16  ;;  %778 = vst.msk [vmem:[#allocation2 + $0x140] sm:$0xff] %vm382_vm8, %v643_v17  ;;  %1123 = vperm.xlu0 %2034, %v853_v18  }
 0x1d9   :  { %1108 = vperm.xlu1 %2035, %v850_v19  }
 0x1db   :  { %v636_v20 = vpop.permute.xlu1 %635  ;;  %v720_v21 = vpop.permute.xlu0 %719  ;;  %v817_v22 = vld [vmem:[#allocation2 + $0x78] sm:$0xff]  ;;  %v832_v45 = vld [vmem:[#allocation2 + $0xf0] sm:$0xff] }
 0x1dc   :  { %777 = vst.msk [vmem:[#allocation2 + $0x138] sm:$0xff] %vm382_vm8, %v636_v20  ;;  %792 = vst.msk [vmem:[#allocation2 + $0x1b0] sm:$0xff] %vm382_vm8, %v720_v21  ;;  %943 = vperm.xlu0 %2034, %v817_v22  }
 0x1dd   :  { %1118 = vperm.xlu1 %2035, %v852_v24  }
 0x1df   :  { %v713_v27 = vpop.permute.xlu1 %712  ;;  %v654_v28 = vpop.permute.xlu0 %653  ;;  %v831_v30 = vld [vmem:[#allocation2 + $0xe8] sm:$0xff]  ;;  %v842_v49 = vld [vmem:[#allocation2 + $0x140] sm:$0xff] }
 0x1e0   :  { %791 = vst.msk [vmem:[#allocation2 + $0x1a8] sm:$0xff] %vm382_vm8, %v713_v27  ;;  %780 = vst.msk [vmem:[#allocation2 + $0x150] sm:$0xff] %vm382_vm8, %v654_v28  ;;  %1013 = vperm.xlu0 %2034, %v831_v30  }
 0x1e1   :  { %938 = vperm.xlu1 %2035, %v816_v32  }
 0x1e3   :  { %v381_v33 = vpop.permute.xlu1 %380  ;;  %v731_v34 = vpop.permute.xlu0 %730  ;;  %v841_v35 = vld [vmem:[#allocation2 + $0x138] sm:$0xff]  ;;  %v856_v53 = vld [vmem:[#allocation2 + $0x1b0] sm:$0xff] }
 0x1e4   :  { %414 = vst.msk [vmem:[#allocation2 + $0xf8] sm:$0xff] %vm382_vm8, %v381_v33  ;;  %794 = vst.msk [vmem:[#allocation2 + $0x1c0] sm:$0xff] %vm382_vm8, %v731_v34  ;;  %1063 = vperm.xlu0 %2034, %v841_v35  }
 0x1e5   :  { %1008 = vperm.xlu1 %2035, %v830_v36  }
 0x1e7   :  { %v647_v37 = vpop.permute.xlu1 %646  ;;  %v665_v25 = vpop.permute.xlu0 %664  ;;  %v855_v38 = vld [vmem:[#allocation2 + $0x1a8] sm:$0xff]  ;;  %v844_v56 = vld [vmem:[#allocation2 + $0x150] sm:$0xff] }
 0x1e8   :  { %779 = vst.msk [vmem:[#allocation2 + $0x148] sm:$0xff] %vm382_vm8, %v647_v37  ;;  %782 = vst.msk [vmem:[#allocation2 + $0x160] sm:$0xff] %vm382_vm8, %v665_v25  ;;  %1133 = vperm.xlu0 %2034, %v855_v38  }
 0x1e9   :  { %1058 = vperm.xlu1 %2035, %v840_v23  }
 0x1eb   :  { %v724_v31 = vpop.permute.xlu1 %723  ;;  %v742_v39 = vpop.permute.xlu0 %741  ;;  %v833_v40 = vld [vmem:[#allocation2 + $0xf8] sm:$0xff]  ;;  %v858_v59 = vld [vmem:[#allocation2 + $0x1c0] sm:$0xff] }
 0x1ec   :  { %793 = vst.msk [vmem:[#allocation2 + $0x1b8] sm:$0xff] %vm382_vm8, %v724_v31  ;;  %796 = vst.msk [vmem:[#allocation2 + $0x1d0] sm:$0xff] %vm382_vm8, %v742_v39  ;;  %1023 = vperm.xlu0 %2034, %v833_v40  }
 0x1ed   :  { %1128 = vperm.xlu1 %2035, %v854_v41  }
 0x1ef   :  { %v658_v42 = vpop.permute.xlu1 %657  ;;  %v676_v43 = vpop.permute.xlu0 %675  ;;  %v843_v44 = vld [vmem:[#allocation2 + $0x148] sm:$0xff]  ;;  %v846_v63 = vld [vmem:[#allocation2 + $0x160] sm:$0xff] }
 0x1f0   :  { %781 = vst.msk [vmem:[#allocation2 + $0x158] sm:$0xff] %vm382_vm8, %v658_v42  ;;  %784 = vst.msk [vmem:[#allocation2 + $0x170] sm:$0xff] %vm382_vm8, %v676_v43  ;;  %1073 = vperm.xlu0 %2034, %v843_v44  }
 0x1f1   :  { %1018 = vperm.xlu1 %2035, %v832_v45  }
 0x1f3   :  { %v735_v46 = vpop.permute.xlu1 %734  ;;  %v753_v47 = vpop.permute.xlu0 %752  ;;  %v857_v48 = vld [vmem:[#allocation2 + $0x1b8] sm:$0xff]  ;;  %v860_v5 = vld [vmem:[#allocation2 + $0x1d0] sm:$0xff] }
 0x1f4   :  { %795 = vst.msk [vmem:[#allocation2 + $0x1c8] sm:$0xff] %vm382_vm8, %v735_v46  ;;  %798 = vst.msk [vmem:[#allocation2 + $0x1e0] sm:$0xff] %vm382_vm8, %v753_v47  ;;  %1143 = vperm.xlu0 %2034, %v857_v48  }
 0x1f5   :  { %1068 = vperm.xlu1 %2035, %v842_v49  }
 0x1f7   :  { %v669_v50 = vpop.permute.xlu1 %668  ;;  %v764_v51 = vpop.permute.xlu0 %763  ;;  %v845_v52 = vld [vmem:[#allocation2 + $0x158] sm:$0xff]  ;;  %v848_v7 = vld [vmem:[#allocation2 + $0x170] sm:$0xff] }
 0x1f8   :  { %783 = vst.msk [vmem:[#allocation2 + $0x168] sm:$0xff] %vm382_vm8, %v669_v50  ;;  %800 = vst.msk [vmem:[#allocation2 + $0x1f0] sm:$0xff] %vm382_vm8, %v764_v51  ;;  %1083 = vperm.xlu0 %2034, %v845_v52  }
 0x1f9   :  { %1138 = vperm.xlu1 %2035, %v856_v53  }
 0x1fb   :  { %v746_v54 = vpop.permute.xlu1 %745  ;;  %v859_v55 = vld [vmem:[#allocation2 + $0x1c8] sm:$0xff]  ;;  %v862_v11 = vld [vmem:[#allocation2 + $0x1e0] sm:$0xff] }
 0x1fc   :  { %797 = vst.msk [vmem:[#allocation2 + $0x1d8] sm:$0xff] %vm382_vm8, %v746_v54  ;;  %1153 = vperm.xlu0 %2034, %v859_v55  }
 0x1fd   :  { %1078 = vperm.xlu1 %2035, %v844_v56  }
 0x1ff   :  { %v680_v57 = vpop.permute.xlu1 %679  ;;  %v847_v58 = vld [vmem:[#allocation2 + $0x168] sm:$0xff]  ;;  %v864_v14 = vld [vmem:[#allocation2 + $0x1f0] sm:$0xff] }
 0x200   :  { %785 = vst.msk [vmem:[#allocation2 + $0x178] sm:$0xff] %vm382_vm8, %v680_v57  ;;  %1093 = vperm.xlu0 %2034, %v847_v58  }
 0x201   :  { %1148 = vperm.xlu1 %2035, %v858_v59  }
 0x203   :  { %v757_v61 = vpop.permute.xlu1 %756  ;;  %v861_v62 = vld [vmem:[#allocation2 + $0x1d8] sm:$0xff] }
 0x204   :  { %799 = vst.msk [vmem:[#allocation2 + $0x1e8] sm:$0xff] %vm382_vm8, %v757_v61  ;;  %1163 = vperm.xlu0 %2034, %v861_v62  }
 0x205   :  { %1088 = vperm.xlu1 %2035, %v846_v63  }
 0x207   :  { %v768_v3 = vpop.permute.xlu1 %767  ;;  %v849_v4 = vld [vmem:[#allocation2 + $0x178] sm:$0xff] }
 0x208   :  { %801 = vst.msk [vmem:[#allocation2 + $0x1f8] sm:$0xff] %vm382_vm8, %v768_v3  ;;  %1103 = vperm.xlu0 %2034, %v849_v4  }
 0x209   :  { %1158 = vperm.xlu1 %2035, %v860_v5  }
 0x20b   :  { %v863_v6 = vld [vmem:[#allocation2 + $0x1e8] sm:$0xff]  ;;  %v869_v10 = vpop.permute.xlu0 %868 }
 0x20c   :  { %1173 = vperm.xlu0 %2034, %v863_v6   ;;  %v1190_v12 = vmul.f32 %v2276_v9, %v869_v10 }
 0x20d   :  { %1098 = vperm.xlu1 %2035, %v848_v7  }
 0x20e   :  { %v1258_v15 = vadd.f32 %v2282_v13, %v1190_v12 }
 0x20f   :  { %v865_v8 = vld [vmem:[#allocation2 + $0x1f8] sm:$0xff] }
 0x210   :  { %1183 = vperm.xlu0 %2034, %v865_v8   ;;  %v1322_v19 = vmax.f32 %v1258_v15, 0.0 }
 0x211   :  { %1168 = vperm.xlu1 %2035, %v862_v11  }
 0x212   :  { %v1387_v30 = vsel %vm1386_vm9, %v1322_v19, 0.0 }
 0x213   :  { %v884_v16 = vpop.permute.xlu0 %883 }
 0x214   :  { %v1193_v22 = vmul.f32 %v2276_v9, %v884_v16 }
 0x215   :  { %1178 = vperm.xlu1 %2035, %v864_v14  }
 0x216   :  { %v1261_v35 = vadd.f32 %v2282_v13, %v1193_v22 }
 0x218   :  { %v874_v17 = vpop.permute.xlu1 %873  ;;  %v1325_v40 = vmax.f32 %v1261_v35, 0.0 }
 0x219   :  { %v1191_v18 = vmul.f32 %v2276_v9, %v874_v17 }
 0x21a   :  { %v1397_v51 = vsel %vm1386_vm9, %v1325_v40, 0.0 }
 0x21b   :  { %v1259_v20 = vadd.f32 %v2282_v13, %v1191_v18  ;;  %v894_v21 = vpop.permute.xlu0 %893 }
 0x21c   :  { %v879_v24 = vpop.permute.xlu1 %878  ;;  %v1195_v43 = vmul.f32 %v2276_v9, %v894_v21 }
 0x21d   :  { %v1323_v27 = vmax.f32 %v1259_v20, 0.0  ;;  %v1192_v28 = vmul.f32 %v2276_v9, %v879_v24 }
 0x21e   :  { %v1263_v53 = vadd.f32 %v2282_v13, %v1195_v43 }
 0x21f   :  { %v1388_v32 = vsel %vm1386_vm9, %v1323_v27, 0.0  ;;  %v1260_v33 = vadd.f32 %v2282_v13, %v1192_v28  ;;  %v954_v34 = vpop.permute.xlu0 %953 }
 0x220   :  { %v1389_v36 = vadd.f32 %v1388_v32, %v1387_v30  ;;  %v1207_v37 = vmul.f32 %v2276_v9, %v954_v34  ;;  %v889_v25 = vpop.permute.xlu1 %888  ;;  %v1327_v0 = vmax.f32 %v1263_v53, 0.0 }
 0x221   :  { %v1324_v38 = vmax.f32 %v1260_v33, 0.0  ;;  %v1194_v23 = vmul.f32 %v2276_v9, %v889_v25 }
 0x222   :  { %v1275_v31 = vadd.f32 %v2282_v13, %v1207_v37  ;;  %v1390_v63 = vrot.slane %v1389_v36, 4  ;;  %v1406_v17 = vsel %vm1386_vm9, %v1327_v0, 0.0 }
 0x223   :  { %v964_v39 = vpop.permute.xlu0 %963  ;;  %v1396_v45 = vsel %vm1386_vm9, %v1324_v38, 0.0  ;;  %v1262_v46 = vadd.f32 %v2282_v13, %v1194_v23 }
 0x224   :  { %v1209_v41 = vmul.f32 %v2276_v9, %v964_v39  ;;  %v949_v42 = vpop.permute.xlu1 %948  ;;  %v1339_v47 = vmax.f32 %v1275_v31, 0.0  ;;  %v1398_v54 = vadd.f32 %v1397_v51, %v1396_v45  ;;  %v1391_v16 = vadd.f32 %v1390_v63, %v1389_v36 }
 0x225   :  { %v1206_v44 = vmul.f32 %v2276_v9, %v949_v42  ;;  %v1326_v57 = vmax.f32 %v1262_v46, 0.0 }
 0x226   :  { %v1277_v48 = vadd.f32 %v2282_v13, %v1209_v41  ;;  %v1460_v58 = vsel %vm1386_vm9, %v1339_v47, 0.0  ;;  %v1399_v1 = vrot.slane %v1398_v54, 4  ;;  %v1392_v37 = vrot.slane %v1391_v16, 2 }
 0x227   :  { %v1274_v49 = vadd.f32 %v2282_v13, %v1206_v44  ;;  %v904_v50 = vpop.permute.xlu0 %903  ;;  %v1405_v5 = vsel %vm1386_vm9, %v1326_v57, 0.0 }
 0x228   :  { %v959_v52 = vpop.permute.xlu1 %958  ;;  %v1341_v59 = vmax.f32 %v1277_v48, 0.0  ;;  %v1197_v11 = vmul.f32 %v2276_v9, %v904_v50  ;;  %v1400_v18 = vadd.f32 %v1399_v1, %v1398_v54  ;;  %v1407_v20 = vadd.f32 %v1406_v17, %v1405_v5 }
 0x229   :  { %v1338_v55 = vmax.f32 %v1274_v49, 0.0  ;;  %v1208_v56 = vmul.f32 %v2276_v9, %v959_v52  ;;  %v1393_v51 = vadd.f32 %v1392_v37, %v1391_v16 }
 0x22a   :  { %v1469_v6 = vsel %vm1386_vm9, %v1341_v59, 0.0  ;;  %v1265_v33 = vadd.f32 %v2282_v13, %v1197_v11  ;;  %v1401_v23 = vrot.slane %v1400_v18, 2  ;;  %v1408_v31 = vrot.slane %v1407_v20, 4 }
 0x22b   :  { %v1459_v29 = vsel %vm1386_vm9, %v1338_v55, 0.0  ;;  %v1276_v26 = vadd.f32 %v2282_v13, %v1208_v56  ;;  %v974_v60 = vpop.permute.xlu0 %973 }
 0x22c   :  { %v1461_v61 = vadd.f32 %v1460_v58, %v1459_v29  ;;  %v899_v62 = vpop.permute.xlu1 %898  ;;  %v1211_v14 = vmul.f32 %v2276_v9, %v974_v60  ;;  %v1329_v47 = vmax.f32 %v1265_v33, 0.0  ;;  %v1402_v54 = vadd.f32 %v1401_v23, %v1400_v18 }
 0x22d   :  { %v1340_v2 = vmax.f32 %v1276_v26, 0.0  ;;  %v1196_v4 = vmul.f32 %v2276_v9, %v899_v62  ;;  %v1409_v55 = vadd.f32 %v1408_v31, %v1407_v20 }
 0x22e   :  { %v1462_v3 = vrot.slane %v1461_v61, 4  ;;  %v1279_v35 = vadd.f32 %v2282_v13, %v1211_v14  ;;  %v1415_v62 = vsel %vm1386_vm9, %v1329_v47, 0.0 }
 0x22f   :  { %v1468_v7 = vsel %vm1386_vm9, %v1340_v2, 0.0  ;;  %v914_v8 = vpop.permute.xlu0 %913  ;;  %v1264_v24 = vadd.f32 %v2282_v13, %v1196_v4 }
 0x230   :  { %v1463_v10 = vadd.f32 %v1462_v3, %v1461_v61  ;;  %v1470_v12 = vadd.f32 %v1469_v6, %v1468_v7  ;;  %v969_v15 = vpop.permute.xlu1 %968  ;;  %v1199_v27 = vmul.f32 %v2276_v9, %v914_v8  ;;  %v1343_v49 = vmax.f32 %v1279_v35, 0.0 }
 0x231   :  { %v1210_v19 = vmul.f32 %v2276_v9, %v969_v15  ;;  %v1328_v40 = vmax.f32 %v1264_v24, 0.0  ;;  %v1410_v6 = vrot.slane %v1409_v55, 2 }
 0x232   :  { %v1464_v21 = vrot.slane %v1463_v10, 2  ;;  %v1471_v22 = vrot.slane %v1470_v12, 4  ;;  %v1267_v41 = vadd.f32 %v2282_v13, %v1199_v27  ;;  %v1478_v0 = vsel %vm1386_vm9, %v1343_v49, 0.0 }
 0x233   :  { %v1278_v28 = vadd.f32 %v2282_v13, %v1210_v19  ;;  %v984_v30 = vpop.permute.xlu0 %983  ;;  %v1414_v57 = vsel %vm1386_vm9, %v1328_v40, 0.0  ;;  %v1411_v33 = vadd.f32 %v1410_v6, %v1409_v55 }
 0x234   :  { %v1465_v32 = vadd.f32 %v1464_v21, %v1463_v10  ;;  %v1472_v34 = vadd.f32 %v1471_v22, %v1470_v12  ;;  %v909_v36 = vpop.permute.xlu1 %908  ;;  %v1213_v25 = vmul.f32 %v2276_v9, %v984_v30  ;;  %v1331_v58 = vmax.f32 %v1267_v41, 0.0 }
 0x235   :  { %v1198_v38 = vmul.f32 %v2276_v9, %v909_v36  ;;  %v1342_v42 = vmax.f32 %v1278_v28, 0.0  ;;  %v1416_v8 = vadd.f32 %v1415_v62, %v1414_v57  ;;  %v1394_v21 = vrot.slane %v1393_v51, 1 }
 0x236   :  { %v1473_v39 = vrot.slane %v1472_v34, 2  ;;  %v1281_v43 = vadd.f32 %v2282_v13, %v1213_v25  ;;  %v1466_v46 = vrot.slane %v1465_v32, 1  ;;  %v1424_v11 = vsel %vm1386_vm9, %v1331_v58, 0.0 }
 0x237   :  { %v1266_v44 = vadd.f32 %v2282_v13, %v1198_v38  ;;  %v924_v45 = vpop.permute.xlu0 %923  ;;  %v1477_v59 = vsel %vm1386_vm9, %v1342_v42, 0.0  ;;  %v1403_v28 = vrot.slane %v1402_v54, 1  ;;  %v1417_v30 = vrot.slane %v1416_v8, 4 }
 0x238   :  { %v1474_v48 = vadd.f32 %v1473_v39, %v1472_v34  ;;  %v979_v50 = vpop.permute.xlu1 %978  ;;  %v1345_v29 = vmax.f32 %v1281_v43, 0.0  ;;  %v1467_v61 = vadd.f32 %v1466_v46, %v1465_v32  ;;  %v1201_v3 = vmul.f32 %v2276_v9, %v924_v45 }
 0x239   :  { %v1330_v52 = vmax.f32 %v1266_v44, 0.0  ;;  %v1212_v53 = vmul.f32 %v2276_v9, %v979_v50  ;;  %v1479_v10 = vadd.f32 %v1478_v0, %v1477_v59  ;;  %v1395_v39 = vadd.f32 %v1394_v21, %v1393_v51 }
 0x23a   :  { %v1475_v56 = vrot.slane %v1474_v48, 1  ;;  %v1487_v12 = vsel %vm1386_vm9, %v1345_v29, 0.0  ;;  %v1269_v22 = vadd.f32 %v2282_v13, %v1201_v3  ;;  %v1404_v43 = vadd.f32 %v1403_v28, %v1402_v54 }
 0x23b   :  { %v1280_v26 = vadd.f32 %v2282_v13, %v1212_v53  ;;  %v994_v60 = vpop.permute.xlu0 %993  ;;  %v1423_v2 = vsel %vm1386_vm9, %v1330_v52, 0.0  ;;  %v1480_v32 = vrot.slane %v1479_v10, 4  ;;  %v1418_v44 = vadd.f32 %v1417_v30, %v1416_v8 }
 0x23c   :  { %v1476_v63 = vadd.f32 %v1475_v56, %v1474_v48  ;;  %v919_v1 = vpop.permute.xlu1 %918  ;;  %v1425_v17 = vadd.f32 %v1424_v11, %v1423_v2  ;;  %v1215_v19 = vmul.f32 %v2276_v9, %v994_v60  ;;  %v1333_v40 = vmax.f32 %v1269_v22, 0.0 }
 0x23d   :  { %v1344_v4 = vmax.f32 %v1280_v26, 0.0  ;;  %v1200_v5 = vmul.f32 %v2276_v9, %v919_v1  ;;  %v1481_v45 = vadd.f32 %v1480_v32, %v1479_v10  ;;  %v1412_v47 = vrot.slane %v1411_v33, 1 }
 0x23e   :  { %v2337_v7 = vsel %vm1711_vm10, %v1476_v63, %v1467_v61  ;;  %v1426_v25 = vrot.slane %v1425_v17, 4  ;;  %v1283_v23 = vadd.f32 %v2282_v13, %v1215_v19  ;;  %v1433_v58 = vsel %vm1386_vm9, %v1333_v40, 0.0 }
 0x23f   :  { %v1486_v14 = vsel %vm1386_vm9, %v1344_v4, 0.0  ;;  %v1268_v15 = vadd.f32 %v2282_v13, %v1200_v5  ;;  %v1034_v16 = vpop.permute.xlu0 %1033  ;;  %v1419_v26 = vrot.slane %v1418_v44, 2  ;;  %v1482_v60 = vrot.slane %v1481_v45, 2 }
 0x240   :  { %v1488_v18 = vadd.f32 %v1487_v12, %v1486_v14  ;;  %v989_v20 = vpop.permute.xlu1 %988  ;;  %v1223_v24 = vmul.f32 %v2276_v9, %v1034_v16  ;;  %v1427_v53 = vadd.f32 %v1426_v25, %v1425_v17  ;;  %v1347_v56 = vmax.f32 %v1283_v23, 0.0 }
 0x241   :  { %v1214_v27 = vmul.f32 %v2276_v9, %v989_v20  ;;  %v1332_v34 = vmax.f32 %v1268_v15, 0.0  ;;  %v1420_v16 = vadd.f32 %v1419_v26, %v1418_v44  ;;  %v1712_v19 = vsel %vm1711_vm10, %v1404_v43, %v1395_v39 }
 0x242   :  { %v1291_v35 = vadd.f32 %v2282_v13, %v1223_v24  ;;  %v1489_v38 = vrot.slane %v1488_v18, 4  ;;  %v1428_v4 = vrot.slane %v1427_v53, 2  ;;  %v1496_v6 = vsel %vm1386_vm9, %v1347_v56, 0.0 }
 0x243   :  { %v1282_v36 = vadd.f32 %v2282_v13, %v1214_v27  ;;  %v1044_v37 = vpop.permute.xlu0 %1043  ;;  %v1432_v48 = vsel %vm1386_vm9, %v1332_v34, 0.0  ;;  %v1413_v20 = vadd.f32 %v1412_v47, %v1411_v33  ;;  %v1483_v28 = vadd.f32 %v1482_v60, %v1481_v45 }
 0x244   :  { %v1029_v31 = vpop.permute.xlu1 %1028  ;;  %v1225_v41 = vmul.f32 %v2276_v9, %v1044_v37  ;;  %v1355_v46 = vmax.f32 %v1291_v35, 0.0  ;;  %v1490_v55 = vadd.f32 %v1489_v38, %v1488_v18  ;;  %v1434_v61 = vadd.f32 %v1433_v58, %v1432_v48 }
 0x245   :  { %v1222_v42 = vmul.f32 %v2276_v9, %v1029_v31  ;;  %v1346_v49 = vmax.f32 %v1282_v36, 0.0  ;;  %v1429_v30 = vadd.f32 %v1428_v4, %v1427_v53  ;;  %v1421_v33 = vrot.slane %v1420_v16, 1 }
 0x246   :  { %v1293_v54 = vadd.f32 %v2282_v13, %v1225_v41  ;;  %v1532_v62 = vsel %vm1386_vm9, %v1355_v46, 0.0  ;;  %v1491_v5 = vrot.slane %v1490_v55, 2  ;;  %v1435_v17 = vrot.slane %v1434_v61, 4 }
 0x247   :  { %v1290_v50 = vadd.f32 %v2282_v13, %v1222_v42  ;;  %v934_v52 = vpop.permute.xlu0 %933  ;;  %v1495_v63 = vsel %vm1386_vm9, %v1346_v49, 0.0  ;;  %v1484_v45 = vrot.slane %v1483_v28, 1  ;;  %v1430_v46 = vrot.slane %v1429_v30, 1 }
 0x248   :  { %v1203_v51 = vmul.f32 %v2276_v9, %v934_v52  ;;  %v1039_v57 = vpop.permute.xlu1 %1038  ;;  %v1357_v11 = vmax.f32 %v1293_v54, 0.0  ;;  %v1497_v18 = vadd.f32 %v1496_v6, %v1495_v63  ;;  %v1492_v32 = vadd.f32 %v1491_v5, %v1490_v55 }
 0x249   :  { %v1354_v59 = vmax.f32 %v1290_v50, 0.0  ;;  %v1224_v29 = vmul.f32 %v2276_v9, %v1039_v57  ;;  %v1436_v23 = vadd.f32 %v1435_v17, %v1434_v61  ;;  %v1714_v49 = vsel %vm1713_vm11, %v1413_v20, %v1712_v19 }
 0x24a   :  { %v1271_v1 = vadd.f32 %v2282_v13, %v1203_v51  ;;  %v1541_v36 = vsel %vm1386_vm9, %v1357_v11, 0.0  ;;  %v1498_v31 = vrot.slane %v1497_v18, 4  ;;  %v1493_v50 = vrot.slane %v1492_v32, 1 }
 0x24b   :  { %v1531_v0 = vsel %vm1386_vm9, %v1354_v59, 0.0  ;;  %v1292_v2 = vadd.f32 %v2282_v13, %v1224_v29  ;;  %v1004_v3 = vpop.permute.xlu0 %1003  ;;  %v1422_v56 = vadd.f32 %v1421_v33, %v1420_v16  ;;  %v1437_v51 = vrot.slane %v1436_v23, 2 }
 0x24c   :  { %v2364_v8 = vadd.f32 %v1532_v62, %v1531_v0  ;;  %v929_v10 = vpop.permute.xlu1 %928  ;;  %v1217_v14 = vmul.f32 %v2276_v9, %v1004_v3  ;;  %v1335_v21 = vmax.f32 %v1271_v1, 0.0  ;;  %v1499_v57 = vadd.f32 %v1498_v31, %v1497_v18 }
 0x24d   :  { %v1356_v12 = vmax.f32 %v1292_v2, 0.0  ;;  %v1202_v15 = vmul.f32 %v2276_v9, %v929_v10  ;;  %v1485_v61 = vadd.f32 %v1484_v45, %v1483_v28  ;;  %v1431_v1 = vadd.f32 %v1430_v46, %v1429_v30 }
 0x24e   :  { %v1285_v37 = vadd.f32 %v2282_v13, %v1217_v14  ;;  %v1442_v40 = vsel %vm1386_vm9, %v1335_v21, 0.0  ;;  %v1534_v62 = vrot.slane %v2364_v8, 4  ;;  %v1494_v2 = vadd.f32 %v1493_v50, %v1492_v32 }
 0x24f   :  { %v1540_v22 = vsel %vm1386_vm9, %v1356_v12, 0.0  ;;  %v1270_v24 = vadd.f32 %v2282_v13, %v1202_v15  ;;  %v1054_v27 = vpop.permute.xlu0 %1053  ;;  %v1438_v6 = vadd.f32 %v1437_v51, %v1436_v23  ;;  %v1500_v10 = vrot.slane %v1499_v57, 2 }
 0x250   :  { %v1227_v34 = vmul.f32 %v2276_v9, %v1054_v27  ;;  %v999_v35 = vpop.permute.xlu1 %998  ;;  %v1542_v39 = vadd.f32 %v1541_v36, %v1540_v22  ;;  %v1349_v52 = vmax.f32 %v1285_v37, 0.0  ;;  %v1535_v19 = vadd.f32 %v1534_v62, %v2364_v8 }
 0x251   :  { %v1334_v25 = vmax.f32 %v1270_v24, 0.0  ;;  %v1216_v38 = vmul.f32 %v2276_v9, %v999_v35  ;;  %v1716_v28 = vsel %vm1715_vm12, %v1422_v56, %v1714_v49  ;;  %v1726_v35 = vsel %vm1713_vm11, %v1485_v61, %v2337_v7 }
 0x252   :  { %v1295_v42 = vadd.f32 %v2282_v13, %v1227_v34  ;;  %v1543_v58 = vrot.slane %v1542_v39, 4  ;;  %v1505_v3 = vsel %vm1386_vm9, %v1349_v52, 0.0  ;;  %v1439_v8 = vrot.slane %v1438_v6, 1 }
 0x253   :  { %v1441_v41 = vsel %vm1386_vm9, %v1334_v25, 0.0  ;;  %v1284_v43 = vadd.f32 %v2282_v13, %v1216_v38  ;;  %v1114_v44 = vpop.permute.xlu0 %1113  ;;  %v1718_v38 = vsel %vm1717_vm13, %v1431_v1, %v1716_v28  ;;  %v1501_v33 = vadd.f32 %v1500_v10, %v1499_v57 }
 0x254   :  { %v1443_v47 = vadd.f32 %v1442_v40, %v1441_v41  ;;  %v1049_v48 = vpop.permute.xlu1 %1048  ;;  %v1359_v54 = vmax.f32 %v1295_v42, 0.0  ;;  %v1239_v29 = vmul.f32 %v2276_v9, %v1114_v44  ;;  %v1544_v11 = vadd.f32 %v1543_v58, %v1542_v39 }
 0x255   :  { %v1348_v53 = vmax.f32 %v1284_v43, 0.0  ;;  %v1226_v55 = vmul.f32 %v2276_v9, %v1049_v48  ;;  %v1536_v23 = vrot.slane %v1535_v19, 2  ;;  %v2399_v40 = vsel %vm1715_vm12, %v1494_v2, %v1726_v35 }
 0x256   :  { %v1444_v63 = vrot.slane %v1443_v47, 4  ;;  %v1550_v14 = vsel %vm1386_vm9, %v1359_v54, 0.0  ;;  %v1307_v15 = vadd.f32 %v2282_v13, %v1239_v29  ;;  %v1545_v30 = vrot.slane %v1544_v11, 2 }
 0x257   :  { %v1504_v59 = vsel %vm1386_vm9, %v1348_v53, 0.0  ;;  %v1294_v26 = vadd.f32 %v2282_v13, %v1226_v55  ;;  %v1124_v60 = vpop.permute.xlu0 %1123  ;;  %v1502_v55 = vrot.slane %v1501_v33, 1  ;;  %v1537_v56 = vadd.f32 %v1536_v23, %v1535_v19 }
 0x258   :  { %v1109_v0 = vpop.permute.xlu1 %1108  ;;  %v1506_v12 = vadd.f32 %v1505_v3, %v1504_v59  ;;  %v1445_v20 = vadd.f32 %v1444_v63, %v1443_v47  ;;  %v1371_v36 = vmax.f32 %v1307_v15, 0.0  ;;  %v1546_v44 = vadd.f32 %v1545_v30, %v1544_v11 }
 0x259   :  { %v1358_v4 = vmax.f32 %v1294_v26, 0.0  ;;  %v1238_v5 = vmul.f32 %v2276_v9, %v1109_v0  ;;  %v1241_v47 = vmul.f32 %v2276_v9, %v1124_v60  ;;  %v1440_v58 = vadd.f32 %v1439_v8, %v1438_v6 }
 0x25a   :  { %v1507_v32 = vrot.slane %v1506_v12, 4  ;;  %v1446_v31 = vrot.slane %v1445_v20, 2  ;;  %v1604_v48 = vsel %vm1386_vm9, %v1371_v36, 0.0  ;;  %v1547_v60 = vrot.slane %v1546_v44, 1 }
 0x25b   :  { %v1549_v16 = vsel %vm1386_vm9, %v1358_v4, 0.0  ;;  %v1306_v17 = vadd.f32 %v2282_v13, %v1238_v5  ;;  %v944_v18 = vpop.permute.xlu0 %943  ;;  %v1309_v63 = vadd.f32 %v2282_v13, %v1241_v47  ;;  %v1503_v5 = vadd.f32 %v1502_v55, %v1501_v33 }
 0x25c   :  { %v1551_v21 = vadd.f32 %v1550_v14, %v1549_v16  ;;  %v1205_v22 = vmul.f32 %v2276_v9, %v944_v18  ;;  %v1119_v24 = vpop.permute.xlu1 %1118  ;;  %v1508_v45 = vadd.f32 %v1507_v32, %v1506_v12  ;;  %v1447_v26 = vadd.f32 %v1446_v31, %v1445_v20 }
 0x25d   :  { %v1370_v27 = vmax.f32 %v1306_v17, 0.0  ;;  %v1240_v42 = vmul.f32 %v2276_v9, %v1119_v24  ;;  %v1720_v12 = vsel %vm1719_vm14, %v1440_v58, %v1718_v38  ;;  %v1538_v14 = vrot.slane %v1537_v56, 1 }
 0x25e   :  { %v1552_v34 = vrot.slane %v1551_v21, 4  ;;  %v1273_v37 = vadd.f32 %v2282_v13, %v1205_v22  ;;  %v1509_v61 = vrot.slane %v1508_v45, 2  ;;  %v1448_v17 = vrot.slane %v1447_v26, 1 }
 0x25f   :  { %v1014_v25 = vpop.permute.xlu0 %1013  ;;  %v1603_v41 = vsel %vm1386_vm9, %v1370_v27, 0.0  ;;  %v1308_v54 = vadd.f32 %v2282_v13, %v1240_v42  ;;  %v1548_v18 = vadd.f32 %v1547_v60, %v1546_v44  ;;  %v1373_v19 = vmax.f32 %v1309_v63, 0.0 }
 0x260   :  { %v939_v39 = vpop.permute.xlu1 %938  ;;  %v1219_v7 = vmul.f32 %v2276_v9, %v1014_v25  ;;  %v1553_v46 = vadd.f32 %v1552_v34, %v1551_v21  ;;  %v1337_v49 = vmax.f32 %v1273_v37, 0.0  ;;  %v1605_v51 = vadd.f32 %v1604_v48, %v1603_v41 }
 0x261   :  { %v1204_v43 = vmul.f32 %v2276_v9, %v939_v39  ;;  %v1372_v15 = vmax.f32 %v1308_v54, 0.0  ;;  %v1510_v22 = vadd.f32 %v1509_v61, %v1508_v45  ;;  %v1539_v25 = vadd.f32 %v1538_v14, %v1537_v56 }
 0x262   :  { %v1287_v50 = vadd.f32 %v2282_v13, %v1219_v7  ;;  %v1554_v62 = vrot.slane %v1553_v46, 2  ;;  %v1451_v0 = vsel %vm1386_vm9, %v1337_v49, 0.0  ;;  %v1606_v6 = vrot.slane %v1605_v51, 4 }
 0x263   :  { %v1272_v52 = vadd.f32 %v2282_v13, %v1204_v43  ;;  %v1064_v53 = vpop.permute.xlu0 %1063  ;;  %v1612_v8 = vsel %vm1386_vm9, %v1372_v15, 0.0  ;;  %v1449_v33 = vadd.f32 %v1448_v17, %v1447_v26  ;;  %v1728_v41 = vsel %vm1717_vm13, %v1503_v5, %v2399_v40 }
 0x264   :  { %v1009_v57 = vpop.permute.xlu1 %1008  ;;  %v1351_v1 = vmax.f32 %v1287_v50, 0.0  ;;  %v1555_v24 = vadd.f32 %v1554_v62, %v1553_v46  ;;  %v1607_v32 = vadd.f32 %v1606_v6, %v1605_v51  ;;  %v1229_v35 = vmul.f32 %v2276_v9, %v1064_v53 }
 0x265   :  { %v1336_v59 = vmax.f32 %v1272_v52, 0.0  ;;  %v1218_v29 = vmul.f32 %v2276_v9, %v1009_v57  ;;  %v2426_v42 = vsel %vm1711_vm10, %v1548_v18, %v1539_v25  ;;  %v1511_v7 = vrot.slane %v1510_v22, 1 }
 0x266   :  { %v1514_v27 = vsel %vm1386_vm9, %v1351_v1, 0.0  ;;  %v1613_v43 = vsel %vm1386_vm9, %v1373_v19, 0.0  ;;  %v1556_v46 = vrot.slane %v1555_v24, 1  ;;  %v1608_v47 = vrot.slane %v1607_v32, 2 }
 0x267   :  { %v1450_v2 = vsel %vm1386_vm9, %v1336_v59, 0.0  ;;  %v1286_v3 = vadd.f32 %v2282_v13, %v1218_v29  ;;  %v1134_v4 = vpop.permute.xlu0 %1133  ;;  %v1614_v48 = vadd.f32 %v1613_v43, %v1612_v8  ;;  %v1297_v49 = vadd.f32 %v2282_v13, %v1229_v35 }
 0x268   :  { %v1452_v10 = vadd.f32 %v1451_v0, %v1450_v2  ;;  %v1059_v11 = vpop.permute.xlu1 %1058  ;;  %v1243_v52 = vmul.f32 %v2276_v9, %v1134_v4  ;;  %v1722_v55 = vsel %vm1721_vm15, %v1449_v33, %v1720_v12  ;;  %v1512_v54 = vadd.f32 %v1511_v7, %v1510_v22 }
 0x269   :  { %v1350_v16 = vmax.f32 %v1286_v3, 0.0  ;;  %v1228_v21 = vmul.f32 %v2276_v9, %v1059_v11  ;;  %v1557_v61 = vadd.f32 %v1556_v46, %v1555_v24  ;;  %v2437_v62 = vadd.f32 %v1608_v47, %v1607_v32 }
 0x26a   :  { %v1453_v20 = vrot.slane %v1452_v10, 4  ;;  %v1615_v63 = vrot.slane %v1614_v48, 4  ;;  %v1361_v0 = vmax.f32 %v1297_v49, 0.0  ;;  %v1311_v2 = vadd.f32 %v2282_v13, %v1243_v52 }
 0x26b   :  { %v1513_v28 = vsel %vm1386_vm9, %v1350_v16, 0.0  ;;  %v1024_v30 = vpop.permute.xlu0 %1023  ;;  %v1296_v31 = vadd.f32 %v2282_v13, %v1228_v21  ;;  %v1729_v32 = vsel %vm1719_vm14, %v1512_v54, %v1728_v41  ;;  %v1610_v25 = vrot.slane %v2437_v62, 1 }
 0x26c   :  { %v1454_v34 = vadd.f32 %v1453_v20, %v1452_v10  ;;  %v1515_v36 = vadd.f32 %v1514_v27, %v1513_v28  ;;  %v1129_v37 = vpop.permute.xlu1 %1128  ;;  %v1221_v38 = vmul.f32 %v2276_v9, %v1024_v30  ;;  %v2448_v19 = vadd.f32 %v1615_v63, %v1614_v48 }
 0x26d   :  { %v1360_v51 = vmax.f32 %v1296_v31, 0.0  ;;  %v1242_v57 = vmul.f32 %v2276_v9, %v1129_v37  ;;  %v1559_v20 = vsel %vm1386_vm9, %v1361_v0, 0.0  ;;  %v1375_v35 = vmax.f32 %v1311_v2, 0.0 }
 0x26e   :  { %v1516_v23 = vrot.slane %v1515_v36, 4  ;;  %v1455_v39 = vrot.slane %v1454_v34, 2  ;;  %v1289_v44 = vadd.f32 %v2282_v13, %v1221_v38  ;;  %v1617_v31 = vrot.slane %v2448_v19, 2 }
 0x26f   :  { %v1074_v45 = vpop.permute.xlu0 %1073  ;;  %v1558_v10 = vsel %vm1386_vm9, %v1360_v51, 0.0  ;;  %v1310_v11 = vadd.f32 %v2282_v13, %v1242_v57  ;;  %v2462_v41 = vsel %vm1713_vm11, %v1557_v61, %v2426_v42  ;;  %v1622_v49 = vsel %vm1386_vm9, %v1375_v35, 0.0 }
 0x270   :  { %v1019_v50 = vpop.permute.xlu1 %1018  ;;  %v1456_v40 = vadd.f32 %v1455_v39, %v1454_v34  ;;  %v1517_v56 = vadd.f32 %v1516_v23, %v1515_v36  ;;  %v1231_v58 = vmul.f32 %v2276_v9, %v1074_v45  ;;  %v1353_v59 = vmax.f32 %v1289_v44, 0.0 }
 0x271   :  { %v1220_v53 = vmul.f32 %v2276_v9, %v1019_v50  ;;  %v1560_v27 = vadd.f32 %v1559_v20, %v1558_v10  ;;  %v1374_v8 = vmax.f32 %v1310_v11, 0.0 }
 0x272   :  { %v1457_v60 = vrot.slane %v1456_v40, 1  ;;  %v1518_v6 = vrot.slane %v1517_v56, 2  ;;  %v1299_v12 = vadd.f32 %v2282_v13, %v1231_v58  ;;  %v1523_v14 = vsel %vm1386_vm9, %v1353_v59, 0.0 }
 0x273   :  { %v1288_v29 = vadd.f32 %v2282_v13, %v1220_v53  ;;  %v1144_v26 = vpop.permute.xlu0 %1143  ;;  %v1561_v44 = vrot.slane %v1560_v27, 4  ;;  %v1621_v53 = vsel %vm1386_vm9, %v1374_v8, 0.0 }
 0x274   :  { %v1069_v1 = vpop.permute.xlu1 %1068  ;;  %v1458_v5 = vadd.f32 %v1457_v60, %v1456_v40  ;;  %v1519_v34 = vadd.f32 %v1518_v6, %v1517_v56  ;;  %v1245_v37 = vmul.f32 %v2276_v9, %v1144_v26  ;;  %v1363_v38 = vmax.f32 %v1299_v12, 0.0 }
 0x275   :  { %v1352_v3 = vmax.f32 %v1288_v29, 0.0  ;;  %v1230_v4 = vmul.f32 %v2276_v9, %v1069_v1  ;;  %v1562_v29 = vadd.f32 %v1561_v44, %v1560_v27  ;;  %v1623_v63 = vadd.f32 %v1622_v49, %v1621_v53 }
 0x276   :  { %v1724_v17 = vsel %vm1723_vm0, %v1458_v5, %v1722_v55  ;;  %v1520_v48 = vrot.slane %v1519_v34, 1  ;;  %v1313_v52 = vadd.f32 %v2282_v13, %v1245_v37  ;;  %v1568_v40 = vsel %vm1386_vm9, %v1363_v38, 0.0 }
 0x277   :  { %v1522_v15 = vsel %vm1386_vm9, %v1352_v3, 0.0  ;;  %v1298_v16 = vadd.f32 %v2282_v13, %v1230_v4  ;;  %v1084_v18 = vpop.permute.xlu0 %1083  ;;  %1986 = vmatprep.mubr.msk.f32.mxu0 %vm1386_vm9, %v1724_v17  ;;  %v1563_v8 = vrot.slane %v1562_v29, 2 }
 0x278   :  { %v1524_v21 = vadd.f32 %v1523_v14, %v1522_v15  ;;  %v1233_v22 = vmul.f32 %v2276_v9, %v1084_v18  ;;  %v1139_v24 = vpop.permute.xlu1 %1138  ;;  %v1377_v0 = vmax.f32 %v1313_v52, 0.0  ;;  %v1521_v2 = vadd.f32 %v1520_v48, %v1519_v34 }
 0x279   :  { %v1362_v28 = vmax.f32 %v1298_v16, 0.0  ;;  %v1244_v30 = vmul.f32 %v2276_v9, %v1139_v24 }
 0x27a   :  { %v1525_v36 = vrot.slane %v1524_v21, 4  ;;  %v1301_v33 = vadd.f32 %v2282_v13, %v1233_v22  ;;  %v1631_v22 = vsel %vm1386_vm9, %v1377_v0, 0.0 }
 0x27b   :  { %v1154_v23 = vpop.permute.xlu0 %1153  ;;  %v1312_v7 = vadd.f32 %v2282_v13, %v1244_v30  ;;  %v1567_v45 = vsel %vm1386_vm9, %v1362_v28, 0.0  ;;  %v1730_v28 = vsel %vm1721_vm15, %v1521_v2, %v1729_v32 }
 0x27c   :  { %v1526_v39 = vadd.f32 %v1525_v36, %v1524_v21  ;;  %v1079_v43 = vpop.permute.xlu1 %1078  ;;  %v1247_v46 = vmul.f32 %v2276_v9, %v1154_v23  ;;  %v1365_v55 = vmax.f32 %v1301_v33, 0.0  ;;  %v1569_v51 = vadd.f32 %v1568_v40, %v1567_v45 }
 0x27d   :  { %v1232_v47 = vmul.f32 %v2276_v9, %v1079_v43  ;;  %v1376_v57 = vmax.f32 %v1312_v7, 0.0  ;;  %v2495_v45 = vadd.f32 %v1617_v31, %v2448_v19 }
 0x27e   :  { %v1527_v50 = vrot.slane %v1526_v39, 2  ;;  %v1315_v58 = vadd.f32 %v2282_v13, %v1247_v46  ;;  %v1577_v3 = vsel %vm1386_vm9, %v1365_v55, 0.0  ;;  %v1570_v11 = vrot.slane %v1569_v51, 4 }
 0x27f   :  { %v1300_v42 = vadd.f32 %v2282_v13, %v1232_v47  ;;  %v1094_v56 = vpop.permute.xlu0 %1093  ;;  %v1630_v12 = vsel %vm1386_vm9, %v1376_v57, 0.0  ;;  %v1624_v46 = vrot.slane %v1623_v63, 4  ;;  %v1564_v55 = vadd.f32 %v1563_v8, %v1562_v29 }
 0x280   :  { %v1235_v54 = vmul.f32 %v2276_v9, %v1094_v56  ;;  %v1149_v59 = vpop.permute.xlu1 %1148  ;;  %v1528_v61 = vadd.f32 %v1527_v50, %v1526_v39  ;;  %v1379_v14 = vmax.f32 %v1315_v58, 0.0  ;;  %v1571_v38 = vadd.f32 %v1570_v11, %v1569_v51 }
 0x281   :  { %v1364_v26 = vmax.f32 %v1300_v42, 0.0  ;;  %v1246_v60 = vmul.f32 %v2276_v9, %v1149_v59  ;;  %v1632_v33 = vadd.f32 %v1631_v22, %v1630_v12  ;;  %v1625_v59 = vadd.f32 %v1624_v46, %v1623_v63  ;;  %v2045_v46 = vld [vmem:[%s2580_s1 + $0x41] ss:$0 sm:$0xff] }
 0x282   :  { %v1303_v1 = vadd.f32 %v2282_v13, %v1235_v54  ;;  %v1529_v10 = vrot.slane %v1528_v61, 1  ;;  %v1640_v23 = vsel %vm1386_vm9, %v1379_v14, 0.0  ;;  %v1572_v42 = vrot.slane %v1571_v38, 2 }
 0x283   :  { %v1576_v4 = vsel %vm1386_vm9, %v1364_v26, 0.0  ;;  %v1314_v5 = vadd.f32 %v2282_v13, %v1246_v60  ;;  %v1164_v6 = vpop.permute.xlu0 %1163  ;;  %v1633_v56 = vrot.slane %v1632_v33, 4 }
 0x284   :  { %v1578_v15 = vadd.f32 %v1577_v3, %v1576_v4  ;;  %v1089_v16 = vpop.permute.xlu1 %1088  ;;  %v1249_v18 = vmul.f32 %v2276_v9, %v1164_v6  ;;  %v1530_v21 = vadd.f32 %v1529_v10, %v1528_v61  ;;  %v1367_v27 = vmax.f32 %v1303_v1, 0.0 }
 0x285   :  { %v1378_v17 = vmax.f32 %v1314_v5, 0.0  ;;  %v1234_v20 = vmul.f32 %v2276_v9, %v1089_v16  ;;  %v1573_v4 = vadd.f32 %v1572_v42, %v1571_v38  ;;  %v1634_v5 = vadd.f32 %v1633_v56, %v1632_v33  ;;  %v2044_v38 = vld [vmem:[%s2580_s1 + $0x40] ss:$0 sm:$0xff] }
 0x286   :  { %v1579_v24 = vrot.slane %v1578_v15, 4  ;;  %v1317_v34 = vadd.f32 %v2282_v13, %v1249_v18  ;;  %v1731_v36 = vsel %vm1723_vm0, %v1530_v21, %v1730_v28  ;;  %v1586_v47 = vsel %vm1386_vm9, %v1367_v27, 0.0 }
 0x287   :  { %v1639_v30 = vsel %vm1386_vm9, %v1378_v17, 0.0  ;;  %v1302_v35 = vadd.f32 %v2282_v13, %v1234_v20  ;;  %v1104_v37 = vpop.permute.xlu0 %1103  ;;  %1987 = vmatmul.mubr.msk.f32.vlgmr.msra.gmra.mrb[0].mxu0 %vm1386_vm9, %v1731_v36  ;;  %v1565_v28 = vrot.slane %v1564_v55, 1 }
 0x288   :  { %v1159_v39 = vpop.permute.xlu1 %1158  ;;  %v1580_v7 = vadd.f32 %v1579_v24, %v1578_v15  ;;  %v1237_v32 = vmul.f32 %v2276_v9, %v1104_v37  ;;  %v1641_v48 = vadd.f32 %v1640_v23, %v1639_v30  ;;  %v1381_v49 = vmax.f32 %v1317_v34, 0.0 }
 0x289   :  { %v1366_v43 = vmax.f32 %v1302_v35, 0.0  ;;  %v1248_v44 = vmul.f32 %v2276_v9, %v1159_v39  ;;  %v1626_v30 = vrot.slane %v1625_v59, 2  ;;  %v1635_v37 = vrot.slane %v1634_v5, 2 }
 0x28a   :  { %v1305_v52 = vadd.f32 %v2282_v13, %v1237_v32  ;;  %v1581_v58 = vrot.slane %v1580_v7, 2  ;;  %v1642_v26 = vrot.slane %v1641_v48, 4  ;;  %v1649_v0 = vsel %vm1386_vm9, %v1381_v49, 0.0 }
 0x28b   :  { %v1585_v50 = vsel %vm1386_vm9, %v1366_v43, 0.0  ;;  %v1316_v53 = vadd.f32 %v2282_v13, %v1248_v44  ;;  %v1174_v40 = vpop.permute.xlu0 %1173  ;;  %v1574_v23 = vrot.slane %v1573_v4, 1 }
 0x28c   :  { %v1587_v51 = vadd.f32 %v1586_v47, %v1585_v50  ;;  %v1099_v57 = vpop.permute.xlu1 %1098  ;;  %v1251_v31 = vmul.f32 %v2276_v9, %v1174_v40  ;;  %v1369_v61 = vmax.f32 %v1305_v52, 0.0  ;;  %v1582_v12 = vadd.f32 %v1581_v58, %v1580_v7 }
 0x28d   :  { %v1380_v19 = vmax.f32 %v1316_v53, 0.0  ;;  %v1236_v54 = vmul.f32 %v2276_v9, %v1099_v57  ;;  %v1643_v16 = vadd.f32 %v1642_v26, %v1641_v48  ;;  %v1566_v48 = vadd.f32 %v1565_v28, %v1564_v55 }
 0x28e   :  { %v1588_v60 = vrot.slane %v1587_v51, 4  ;;  %v1319_v29 = vadd.f32 %v2282_v13, %v1251_v31  ;;  %v1595_v18 = vsel %vm1386_vm9, %v1369_v61, 0.0  ;;  %v1583_v39 = vrot.slane %v1582_v12, 1 }
 0x28f   :  { %v1648_v1 = vsel %vm1386_vm9, %v1380_v19, 0.0  ;;  %v1304_v2 = vadd.f32 %v2282_v13, %v1236_v54  ;;  %v1184_v3 = vpop.permute.xlu0 %1183  ;;  %v1644_v7 = vrot.slane %v1643_v16, 2  ;;  %v1627_v53 = vadd.f32 %v1626_v30, %v1625_v59 }
 0x290   :  { %v1589_v6 = vadd.f32 %v1588_v60, %v1587_v51  ;;  %v1650_v10 = vadd.f32 %v1649_v0, %v1648_v1  ;;  %v1169_v11 = vpop.permute.xlu1 %1168  ;;  %v1253_v63 = vmul.f32 %v2276_v9, %v1184_v3  ;;  %v1383_v21 = vmax.f32 %v1319_v29, 0.0 }
 0x291   :  { %v1368_v14 = vmax.f32 %v1304_v2, 0.0  ;;  %v1250_v15 = vmul.f32 %v2276_v9, %v1169_v11  ;;  %v1636_v40 = vadd.f32 %v1635_v37, %v1634_v5  ;;  %v1619_v51 = vrot.slane %v2495_v45, 1 }
 0x292   :  { %v1590_v17 = vrot.slane %v1589_v6, 2  ;;  %v1651_v20 = vrot.slane %v1650_v10, 4  ;;  %v1321_v24 = vadd.f32 %v2282_v13, %v1253_v63  ;;  %v1658_v32 = vsel %vm1386_vm9, %v1383_v21, 0.0 }
 0x293   :  { %v1594_v22 = vsel %vm1386_vm9, %v1368_v14, 0.0  ;;  %v1318_v27 = vadd.f32 %v2282_v13, %v1250_v15  ;;  %v1575_v57 = vadd.f32 %v1574_v23, %v1573_v4  ;;  %v1584_v31 = vadd.f32 %v1583_v39, %v1582_v12  ;;  %v20_v23 = vld [vmem:[%s2580_s1 + $0x20] sm:$0xff]  ;;  %v21_v39 = vld [vmem:[%s2580_s1 + $0x28] sm:$0xff] }
 0x294   :  { %v1652_v34 = vadd.f32 %v1651_v20, %v1650_v10  ;;  %v1596_v35 = vadd.f32 %v1595_v18, %v1594_v22  ;;  %v1179_v36 = vpop.permute.xlu1 %1178  ;;  %v1591_v8 = vadd.f32 %v1590_v17, %v1589_v6  ;;  %v1385_v13 = vmax.f32 %v1321_v24, 0.0 }
 0x295   :  { %v1382_v9 = vmax.f32 %v1318_v27, 0.0  ;;  %v1252_v33 = vmul.f32 %v2044_v38, %v1179_v36  ;;  %v1645_v54 = vadd.f32 %v1644_v7, %v1643_v16  ;;  %v1628_v29 = vrot.slane %v1627_v53, 1  ;;  %v22_v7 = vld [vmem:[%s2580_s1 + $0x30] sm:$0xff] }
 0x296   :  { %v1597_v43 = vrot.slane %v1596_v35, 4  ;;  %v1653_v49 = vrot.slane %v1652_v34, 2  ;;  %v1592_v42 = vrot.slane %v1591_v8, 1  ;;  %v1667_v26 = vsel %vm1386_vm9, %v1385_v13, 0.0  ;;  %v23_v13 = vld [vmem:[%s2580_s1 + $0x38] sm:$0xff] }
 0x297   :  { %v1657_v44 = vsel %vm1386_vm9, %v1382_v9, 0.0  ;;  %v1320_v47 = vadd.f32 %v2045_v46, %v1252_v33  ;;  %v1637_v59 = vrot.slane %v1636_v40, 1  ;;  %v1734_v3 = vsel %vm1715_vm12, %v1566_v48, %v2462_v41 }
 0x298   :  { %v1598_v50 = vadd.f32 %v1597_v43, %v1596_v35  ;;  %v1659_v52 = vadd.f32 %v1658_v32, %v1657_v44  ;;  %v1654_v61 = vadd.f32 %v1653_v49, %v1652_v34  ;;  %v1593_v2 = vadd.f32 %v1592_v42, %v1591_v8 }
 0x299   :  { %v1384_v56 = vmax.f32 %v1320_v47, 0.0  ;;  %v1735_v10 = vsel %vm1717_vm13, %v1575_v57, %v1734_v3  ;;  %v1620_v11 = vadd.f32 %v1619_v51, %v2495_v45  ;;  %v1646_v12 = vrot.slane %v1645_v54, 1  ;;  %v1958_v47 = vld [vmem:[%s2580_s1 + $0x42] ss:$0 sm:$0xff] }
 0x29a   :  { %v1599_v58 = vrot.slane %v1598_v50, 2  ;;  %v1660_v19 = vrot.slane %v1659_v52, 4  ;;  %v1736_v14 = vsel %vm1719_vm14, %v1584_v31, %v1735_v10  ;;  %v1655_v63 = vrot.slane %v1654_v61, 1 }
 0x29b   :  { %v1666_v60 = vsel %vm1386_vm9, %v1384_v56, 0.0  ;;  %v1611_v18 = vadd.f32 %v1610_v25, %v2437_v62  ;;  %v1629_v20 = vadd.f32 %v1628_v29, %v1627_v53  ;;  %v1737_v41 = vsel %vm1721_vm15, %v1593_v2, %v1736_v14 }
 0x29c   :  { %v1661_v55 = vadd.f32 %v1660_v19, %v1659_v52  ;;  %v1668_v0 = vadd.f32 %v1667_v26, %v1666_v60  ;;  %v1600_v1 = vadd.f32 %v1599_v58, %v1598_v50  ;;  %v1638_v21 = vadd.f32 %v1637_v59, %v1636_v40 }
 0x29d   :  { %v1647_v45 = vadd.f32 %v1646_v12, %v1645_v54  ;;  %v1739_v28 = vsel %vm1711_vm10, %v1620_v11, %v1611_v18  ;;  %v1656_v30 = vadd.f32 %v1655_v63, %v1654_v61  ;;  %v2075_v43 = vmov 0.0|0.0   ;;  %v1963_v63 = vld [vmem:[%s2580_s1 + $0x43] ss:$0 sm:$0xff] }
 0x29e   :  { %v1662_v5 = vrot.slane %v1661_v55, 2  ;;  %v1669_v4 = vrot.slane %v1668_v0, 4  ;;  %v1601_v6 = vrot.slane %v1600_v1, 1  ;;  %v1740_v36 = vsel %vm1713_vm11, %v1629_v20, %v1739_v28  ;;  %2011 = vmatprep.subr.bf16.mxu1 %v2075_v43 }
 0x29f   :  { %v1741_v62 = vsel %vm1715_vm12, %v1638_v21, %v1740_v36  ;;  %v2012_v32 = vpack.c.bf16 %v21_v39, %v20_v23  ;;  %v2077_v44 = vmov 0.0   ;;  %v2015_v46 = vpack.c.bf16 %v23_v13, %v22_v7 }
 0x2a0   :  { %v1663_v15 = vadd.f32 %v1662_v5, %v1661_v55  ;;  %v1670_v16 = vadd.f32 %v1669_v4, %v1668_v0  ;;  %v1602_v17 = vadd.f32 %v1601_v6, %v1600_v1  ;;  %v1742_v25 = vsel %vm1717_vm13, %v1647_v45, %v1741_v62  ;;  %2000 = vmatprep.mubr.msk.f32.mxu1 %vm2076_vm1, %v2077_v44 }
 0x2a1   :  { %v1743_v9 = vsel %vm1719_vm14, %v1656_v30, %v1742_v25  ;;  %2013 = vmatpush3.bf16.msra.mxu1 %v2012_v32 }
 0x2a2   :  { %v1664_v22 = vrot.slane %v1663_v15, 1  ;;  %v1671_v24 = vrot.slane %v1670_v16, 2  ;;  %v1738_v27 = vsel %vm1723_vm0, %v1602_v17, %v1737_v41  ;;  %2014 = vmatprep.subr.bf16.mxu1 %v2075_v43 }
 0x2a3   :  { %1989 = vmatprep.mubr.msk.f32.mxu0 %vm1386_vm9, %v1738_v27 }
 0x2a4   :  { %v1672_v34 = vadd.f32 %v1671_v24, %v1670_v16  ;;  %v1665_v35 = vadd.f32 %v1664_v22, %v1663_v15 }
 0x2a5   :  { %2016 = vmatpush3.bf16.msra.mxu1 %v2015_v46 }
 0x2a6   :  { %v1673_v37 = vrot.slane %v1672_v34, 1  ;;  %v1744_v38 = vsel %vm1721_vm15, %v1665_v35, %v1743_v9 }
 0x2a8   :  { %v1674_v8 = vadd.f32 %v1673_v37, %v1672_v34 }
 0x2aa   :  { %v1745_v33 = vsel %vm1723_vm0, %v1674_v8, %v1744_v38 }
 0x2ab   :  { %1990 = vmatmul.mubr.msk.f32.gmra.mrb[2].mxu0 %vm1386_vm9, %v1745_v33 }
 0x35a   :  { %v1988_v48 = vpop.f32.mrb[0].mxu0 }
 0x35b   :  { %v1826_v49 = vadd.f32 %v1988_v48, %v1958_v47  ;;  %v1820_v50 = vpop.f32.mrb[1].mxu0 }
 0x35c   :  { %v1821_v52 = vadd.f32 %v1958_v47, %v1820_v50 }
 0x35d   :  { %v1840_v53 = vmax.f32 %v1826_v49, 0.0 }
 0x35e   :  { %v1839_v40 = vmax.f32 %v1821_v52, 0.0 }
 0x35f   :  { %v1844_v42 = vsel %vm1386_vm9, %v1840_v53, 0.0 }
 0x360   :  { %v1843_v56 = vsel %vm1386_vm9, %v1839_v40, 0.0 }
 0x361   :  { %v1845_v51 = vadd.f32 %v1844_v42, %v1843_v56 }
 0x363   :  { %v1846_v57 = vrot.slane %v1845_v51, 4 }
 0x365   :  { %v1847_v26 = vadd.f32 %v1846_v57, %v1845_v51 }
 0x367   :  { %v1848_v1 = vrot.slane %v1847_v26, 2 }
 0x369   :  { %v1849_v2 = vadd.f32 %v1848_v1, %v1847_v26 }
 0x36b   :  { %v1850_v6 = vrot.slane %v1849_v2, 1 }
 0x36d   :  { %v1851_v11 = vadd.f32 %v1850_v6, %v1849_v2 }
 0x37e   :  { %v1991_v58 = vpop.f32.mrb[2].mxu0 }
 0x37f   :  { %v1836_v19 = vadd.f32 %v1991_v58, %v1958_v47  ;;  %v1830_v31 = vpop.f32.mrb[3].mxu0 }
 0x380   :  { %v1831_v54 = vadd.f32 %v1958_v47, %v1830_v31 }
 0x381   :  { %v1842_v60 = vmax.f32 %v1836_v19, 0.0 }
 0x382   :  { %v1841_v61 = vmax.f32 %v1831_v54, 0.0 }
 0x383   :  { %v1853_v55 = vsel %vm1386_vm9, %v1842_v60, 0.0 }
 0x384   :  { %v1852_v0 = vsel %vm1386_vm9, %v1841_v61, 0.0 }
 0x385   :  { %v1854_v29 = vadd.f32 %v1853_v55, %v1852_v0 }
 0x387   :  { %v1855_v59 = vrot.slane %v1854_v29, 4 }
 0x389   :  { %v1856_v3 = vadd.f32 %v1855_v59, %v1854_v29 }
 0x38b   :  { %v1857_v5 = vrot.slane %v1856_v3, 2 }
 0x38d   :  { %v1858_v4 = vadd.f32 %v1857_v5, %v1856_v3 }
 0x38f   :  { %v1859_v10 = vrot.slane %v1858_v4, 1 }
 0x391   :  { %v1860_v12 = vadd.f32 %v1859_v10, %v1858_v4 }
 0x393   :  { %v1867_v14 = vsel %vm1711_vm10, %v1860_v12, %v1851_v11 }
 0x394   :  { %2001 = vmatmul.mubr.msk.f32.vlgmr.msra.gmra.mrb[0].mxu1 %vm1386_vm9, %v1867_v14 }
 0x467   :  { %v1936_v15 = vpop.f32.mrb[0].mxu1 }
 0x468   :  { %v1937_v16 = vadd.f32 %v1963_v63, %v1936_v15  ;;  %v2002_v17 = vpop.f32.mrb[1].mxu1 }
 0x46a   :  { %1941 = vst.msk [vmem:[#allocation3] sm:$0x3] %vm1940_vm2, %v1937_v16 }
 0x46b   :  { %2057 = shalt.err (!%p2054_p4)
}
 0x46c   :  { %s2058_s22 = scalar_lea.hbm %s2581_s2, 32 }
 0x46d   :  { %p2059_p5 = scmp.ne.s32.totalorder %s2581_s2, %s2058_s22  ;;  %p2062_p6 = scmp.lt.u32.totalorder %s2058_s22, %s2581_s2 }
 0x46f   :  { %p2064_p7 = pnand %p2062_p6, %p2059_p5 }
 0x471   :  { %2067 = shalt.err (!%p2064_p7)
}
 0x472   :  { %1951 = dma.vmem_to_hbm [thread:$0]  %s1949_s0, 32, %s2581_s2, [#allocation4]  }
 0x473   :  { %2068 = dma.done.wait [#allocation4], 32  }
 0x474   :  { %2069 = vsyncadd [#allocation4], 4294967264 }
 0x475   :  { %1955 = vsyncpa [#allocation4], 1 }

</bundles_post_ra>
